<compile_context>
chip_gen: v5e
topology: v5e:2x2
jax: 0.10.0
libtpu: 0.0.40
codegen_flags: <defaults>
</compile_context>

<pallas_src>
import functools

import jax
import jax.numpy as jnp
from jax import lax
from jax.experimental import pallas as pl
from jax.experimental.pallas import tpu as pltpu

_VMEM = pltpu.MemorySpace.VMEM
_SMEM = pltpu.MemorySpace.SMEM


def _vmem_limit_bytes(n, m):
    need = 4 * n * n + 4 * n * (2 * m + 24) + (1 << 16)
    return int(min(100 * 1024 * 1024, max(8 * 1024 * 1024, 2 * need)))


# ----------------------------------------------------------------------------
# Pallas kernels
# ----------------------------------------------------------------------------
def _init_kernel(a_ref, b_ref, x0_ref, g_out, u_out, scal_out):
    """Initial objective/gradient evaluation + first direction matvec, fused.

    Packed lane-dense scalars (review item #9):
      scal[0,0] = fx0   = 0.5 x0.(A x0) - b.x0
      scal[0,1] = gg0   = grad0.grad0
      scal[0,2] = c0    = drt0.(A drt0)            (drt0 = -grad0)
      scal[0,3] = uu0   = |A drt0|^2
      scal[0,4] = x0sq  = x0.x0
    """
    x0 = x0_ref[...]
    a = a_ref[...]
    b = b_ref[...]
    ax = jnp.dot(x0, a, preferred_element_type=jnp.float32)        # MXU
    grad = ax - b
    g_out[...] = grad
    agrad = jnp.dot(grad, a, preferred_element_type=jnp.float32)   # MXU
    u_out[...] = -agrad                      # u0 = A @ drt0,  drt0 = -grad0
    scal_out[...] = jnp.zeros_like(scal_out)
    scal_out[0:1, 0:1] = (0.5 * jnp.sum(x0 * ax, keepdims=True)
                          - jnp.sum(x0 * b, keepdims=True))
    scal_out[0:1, 1:2] = jnp.sum(grad * grad, keepdims=True)
    scal_out[0:1, 2:3] = jnp.sum(grad * agrad, keepdims=True)
    scal_out[0:1, 3:4] = jnp.sum(agrad * agrad, keepdims=True)
    scal_out[0:1, 4:5] = jnp.sum(x0 * x0, keepdims=True)


@functools.lru_cache(maxsize=None)
def _get_init_call(n, m):
    return pl.pallas_call(
        _init_kernel,
        out_shape=(jax.ShapeDtypeStruct((1, n), jnp.float32),      # grad0
                   jax.ShapeDtypeStruct((1, n), jnp.float32),      # u0 = A @ drt0
                   jax.ShapeDtypeStruct((1, 128), jnp.float32)),   # packed scalars
        in_specs=[pl.BlockSpec(memory_space=_VMEM),    # A (n, n)
                  pl.BlockSpec(memory_space=_VMEM),    # b (1, n)
                  pl.BlockSpec(memory_space=_VMEM)],   # x0 (1, n)
        out_specs=(pl.BlockSpec(memory_space=_VMEM),) * 3,
        compiler_params=pltpu.CompilerParams(
            vmem_limit_bytes=_vmem_limit_bytes(n, m)),
        cost_estimate=pl.CostEstimate(flops=4 * n * n + 10 * n,
                                      transcendentals=0,
                                      bytes_accessed=4 * (n * n + 5 * n + 128)),
    )


def _update_kernel(iscal_ref, fscal_ref, ysinv_ref, a_ref, x_ref, g_ref, d_ref,
                   u_ref, s_in_ref, y_in_ref,
                   x_out, g_out, d_out, u_out, s_out, y_out, scal_out):
    """One fused L-BFGS outer-iteration update:

      x'    = x + step * drt
      grad' = grad + step * u                       (u = A @ drt, precomputed)
      add_correction(s = step*drt, y = step*u)      -> S/Y ring, newest row m-1
      drt'  = apply_Hv(grad', a=-1)                 (two-loop, unrolled over m)
      u'    = A @ drt'                              (MXU matvec for next line search)
      scal  = [grad'.drt', drt'.(A drt'), grad'.u', u'.u']  lane-dense packed

    The dynamic correction count `ncorr` only enters as a mask; all ring-buffer
    row indices are static (no dynamic pl.ds / modulo address math).
    """
    m = s_in_ref.shape[0]
    ncorr = iscal_ref[0]           # int32 (SMEM)
    step = fscal_ref[0]            # f32   (SMEM)
    inv_theta = fscal_ref[1]       # f32   (SMEM), 1/theta with theta = y.y / y.s

    drt = d_ref[...]               # (1, N)
    u = u_ref[...]                 # (1, N)
    s_vec = step * drt             # s = x' - x
    y_vec = step * u               # y = grad' - grad
    x_out[...] = x_ref[...] + s_vec
    grad_new = g_ref[...] + y_vec
    g_out[...] = grad_new

    # --- add_correction: shift the ring up one row; newest correction -> row m-1.
    shifted_s = None
    shifted_y = None
    if m > 1:
        shifted_s = s_in_ref[1:m, :]           # (m-1, N), static slices only
        shifted_y = y_in_ref[1:m, :]
        s_out[0:m - 1, :] = shifted_s
        y_out[0:m - 1, :] = shifted_y
    s_out[m - 1:m, :] = s_vec
    y_out[m - 1:m, :] = y_vec

    def s_row(r):
        return s_vec if r == m - 1 else shifted_s[r:r + 1, :]

    def y_row(r):
        return y_vec if r == m - 1 else shifted_y[r:r + 1, :]

    # --- apply_Hv(grad', a=-1): two-loop recursion, fully unrolled over m.
    res = -grad_new
    alphas = []
    for i in range(m):                          # newest -> oldest
        r = m - 1 - i
        active = jnp.full((1, 1), i, jnp.int32) < ncorr
        raw = jnp.sum(s_row(r) * res, keepdims=True) * ysinv_ref[r]
        alpha = jnp.where(active, raw, 0.0)
        alphas.append(alpha)
        res = res - alpha * y_row(r)
    res = res * inv_theta
    for i in reversed(range(m)):                # oldest -> newest
        r = m - 1 - i
        active = jnp.full((1, 1), i, jnp.int32) < ncorr
        beta = jnp.sum(y_row(r) * res, keepdims=True) * ysinv_ref[r]
        coef = jnp.where(active, alphas[i] - beta, 0.0)
        res = res + coef * s_row(r)
    d_out[...] = res

    # --- MXU matvec for the NEXT line search (A symmetric: res @ A == A @ res).
    u_new = jnp.dot(res, a_ref[...], preferred_element_type=jnp.float32)
    u_out[...] = u_new

    # --- packed lane-dense scalar outputs (no (1,1) outputs).
    scal_out[...] = jnp.zeros_like(scal_out)
    scal_out[0:1, 0:1] = jnp.sum(grad_new * res, keepdims=True)     # dg_init'
    scal_out[0:1, 1:2] = jnp.sum(res * u_new, keepdims=True)        # c'
    scal_out[0:1, 2:3] = jnp.sum(grad_new * u_new, keepdims=True)   # gu'
    scal_out[0:1, 3:4] = jnp.sum(u_new * u_new, keepdims=True)      # uu'


@functools.lru_cache(maxsize=None)
def _get_update_call(n, m):
    return pl.pallas_call(
        _update_kernel,
        out_shape=(jax.ShapeDtypeStruct((1, n), jnp.float32),      # x'
                   jax.ShapeDtypeStruct((1, n), jnp.float32),      # grad'
                   jax.ShapeDtypeStruct((1, n), jnp.float32),      # drt'
                   jax.ShapeDtypeStruct((1, n), jnp.float32),      # u' = A @ drt'
                   jax.ShapeDtypeStruct((m, n), jnp.float32),      # S ring (new)
                   jax.ShapeDtypeStruct((m, n), jnp.float32),      # Y ring (new)
                   jax.ShapeDtypeStruct((1, 128), jnp.float32)),   # packed scalars
        in_specs=[pl.BlockSpec(memory_space=_SMEM),    # [ncorr]           int32 (1,)
                  pl.BlockSpec(memory_space=_SMEM),    # [step, 1/theta]   f32   (2,)
                  pl.BlockSpec(memory_space=_SMEM),    # 1/ys ring (new)   f32   (m,)
                  pl.BlockSpec(memory_space=_VMEM),    # A (n, n)
                  pl.BlockSpec(memory_space=_VMEM),    # x (1, n)
                  pl.BlockSpec(memory_space=_VMEM),    # grad (1, n)
                  pl.BlockSpec(memory_space=_VMEM),    # drt (1, n)
                  pl.BlockSpec(memory_space=_VMEM),    # u = A @ drt (1, n)
                  pl.BlockSpec(memory_space=_VMEM),    # S ring (old) (m, n)
                  pl.BlockSpec(memory_space=_VMEM)],   # Y ring (old) (m, n)
        out_specs=(pl.BlockSpec(memory_space=_VMEM),) * 7,
        compiler_params=pltpu.CompilerParams(
            vmem_limit_bytes=_vmem_limit_bytes(n, m)),
        cost_estimate=pl.CostEstimate(
            flops=2 * n * n + (4 * m + 20) * n,
            transcendentals=0,
            bytes_accessed=4 * (n * n + (4 * m + 10) * n + 128)),
    )


# ----------------------------------------------------------------------------
# Device-side Wolfe line search on the 1-D quadratic restriction
# (pure scalar XLA while-loops: zero Pallas calls / zero A traffic per trial)
# ----------------------------------------------------------------------------
def _line_search_quadratic(fx0, dg0, c, step_in, *, maxls, wolfe_decr,
                           wolfe_curv):
    """phi(s) = fx0 + s*dg0 + 0.5*s^2*c,  phi'(s) = dg0 + s*c.
    Returns (step, fx, err); err: 0 ok, 1 'direction increases the objective',
    2 'line search failed'."""
    f32 = jnp.float32
    zero = jnp.asarray(0.0, f32)

    def phi(s):
        return fx0 + s * dg0 + 0.5 * s * s * c

    def dphi(s):
        return dg0 + s * c

    test_decr = wolfe_decr * dg0
    test_curv = -wolfe_curv * dg0
    err0 = jnp.where(dg0 > 0.0, 1, 0).astype(jnp.int32)

    st0 = dict(i=jnp.asarray(0, jnp.int32), it=jnp.asarray(0, jnp.int32),
               step=jnp.asarray(step_in, f32), step_res=zero,
               fx=jnp.asarray(fx0, f32), dg=jnp.asarray(dg0, f32),
               step_lo=zero, fx_lo=jnp.asarray(fx0, f32),
               dg_lo=jnp.asarray(dg0, f32),
               step_hi=zero, fx_hi=zero, dg_hi=zero,
               done=jnp.asarray(False), success=jnp.asarray(False), err=err0)

    def cond1(s):
        return (s['i'] < maxls) & (~s['done']) & (~s['success']) & (s['err'] == 0)

    def body1(s):                       # bracketing / expansion phase
        step = s['step']
        fx = phi(step)
        dg = dphi(step)
        cond_a = ((fx - fx0 > step * test_decr)
                  | ((s['step_lo'] > 0.0) & (fx >= s['fx_lo'])))
        cond_b = (~cond_a) & (jnp.abs(dg) <= test_curv)    # early Wolfe success
        upd_lo = (~cond_a) & (~cond_b)
        expand = upd_lo & (dg < 0.0)
        n = dict(s)
        n['i'] = s['i'] + 1
        n['step_res'], n['fx'], n['dg'] = step, fx, dg
        n['step_hi'] = jnp.where(cond_a, step,
                                 jnp.where(upd_lo, s['step_lo'], s['step_hi']))
        n['fx_hi'] = jnp.where(cond_a, fx,
                               jnp.where(upd_lo, s['fx_lo'], s['fx_hi']))
        n['dg_hi'] = jnp.where(cond_a, dg,
                               jnp.where(upd_lo, s['dg_lo'], s['dg_hi']))
        n['step_lo'] = jnp.where(upd_lo, step, s['step_lo'])
        n['fx_lo'] = jnp.where(upd_lo, fx, s['fx_lo'])
        n['dg_lo'] = jnp.where(upd_lo, dg, s['dg_lo'])
        n['done'] = cond_a | (upd_lo & (dg >= 0.0))
        n['success'] = cond_b
        n['step'] = jnp.where(expand, step * 2.0, step)
        n['it'] = s['it'] + expand.astype(jnp.int32)
        return n

    ph1 = lax.while_loop(cond1, body1, st0)
    success = ph1['success']

    st2 = dict(i=ph1['it'], step=ph1['step'], step_res=ph1['step_res'],
               fx=ph1['fx'], dg=ph1['dg'],
               step_lo=ph1['step_lo'], fx_lo=ph1['fx_lo'], dg_lo=ph1['dg_lo'],
               step_hi=ph1['step_hi'], fx_hi=ph1['fx_hi'], dg_hi=ph1['dg_hi'],
               done=jnp.asarray(False), err=ph1['err'])

    def cond2(s):
        return (s['i'] < maxls) & (~s['done']) & (~success) & (s['err'] == 0)

    def body2(s):                       # zoom / interpolation phase
        num = ((s['fx_hi'] - s['fx_lo']) * s['step_lo']
               - (s['step_hi'] ** 2 - s['step_lo'] ** 2) * s['dg_lo'] * 0.5)
        den = s['fx_hi'] - s['fx_lo'] - (s['step_hi'] - s['step_lo']) * s['dg_lo']
        cand = num / den
        smin = jnp.minimum(s['step_lo'], s['step_hi'])
        smax = jnp.maximum(s['step_lo'], s['step_hi'])
        # NaN-safe interior test (review correctness fix): a non-finite or
        # out-of-bracket candidate falls back to bisection.
        ok = jnp.isfinite(cand) & (cand > smin) & (cand < smax)
        step = jnp.where(ok, cand, (s['step_lo'] + s['step_hi']) * 0.5)
        fx = phi(step)
        dg = dphi(step)
        cond_a = (fx - fx0 > step * test_decr) | (fx >= s['fx_lo'])
        err_a = cond_a & (step == s['step_hi'])
        cond_b = (~cond_a) & (jnp.abs(dg) <= test_curv)
        err_b = (~cond_a) & (~cond_b) & (step == s['step_lo'])
        upd_hi = cond_a & (~err_a)
        upd_lo = (~cond_a) & (~cond_b) & (~err_b)
        n = dict(s)
        n['i'] = s['i'] + 1
        n['step'], n['step_res'], n['fx'], n['dg'] = step, step, fx, dg
        n['step_hi'] = jnp.where(upd_hi, step, s['step_hi'])
        n['fx_hi'] = jnp.where(upd_hi, fx, s['fx_hi'])
        n['dg_hi'] = jnp.where(upd_hi, dg, s['dg_hi'])
        n['step_lo'] = jnp.where(upd_lo, step, s['step_lo'])
        n['fx_lo'] = jnp.where(upd_lo, fx, s['fx_lo'])
        n['dg_lo'] = jnp.where(upd_lo, dg, s['dg_lo'])
        n['done'] = cond_b
        n['err'] = jnp.where(err_a | err_b, jnp.asarray(2, jnp.int32), s['err'])
        return n

    ph2 = lax.while_loop(cond2, body2, st2)
    return ph2['step_res'], ph2['fx'], ph2['err']


# ----------------------------------------------------------------------------
# Solver (mirrors PyTorch BFGSSolver.forward; BFGSMat state lives in the carry)
# ----------------------------------------------------------------------------
class BFGSSolver:
    """L-BFGS with Wolfe line search for the quadratic objective
    f(x) = 0.5 * x^T A x - b^T x (A symmetric), fully on device.

    Semantics follow the PyTorch BFGSSolver/BFGSMat reference; the whole solve
    runs inside one jitted function -> a single host<->device sync per solve.
    """
    # TODO(synk): the reference takes an arbitrary host-side python objective
    # `fn`; that cannot run inside device control flow, so this port is
    # specialised to the quadratic objective (which also enables the
    # closed-form line-search trials).  Per-iteration verbose printing and
    # mid-iteration RuntimeError raises are replaced by a status code checked
    # after the solve.

    def __init__(self, A, b, m=30, geps=1e-5, feps=1e-9, maxiter=1000,
                 maxls=20, fpast=1, verbose=0):
        A = jnp.asarray(A, jnp.float32)
        n = A.shape[0]
        assert A.shape == (n, n)
        self.dim = int(n)
        self.m = int(m)
        self.geps = float(geps)
        self.feps = float(feps)
        self.maxiter = int(maxiter)
        self.wolfe_decr = 0.0001
        self.wolfe_curv = 0.9
        self.maxls = int(maxls)
        self.fpast = int(fpast)
        self.verbose = int(verbose)
        self._A = A
        self._b = jnp.asarray(b, jnp.float32).reshape(1, n)
        self._init_call = _get_init_call(self.dim, self.m)
        self._update_call = _get_update_call(self.dim, self.m)
        self._solve = jax.jit(self._solve_impl)

    # -- device-side solve ----------------------------------------------------
    def _solve_impl(self, x0_flat, A, b2):
        n, m, fpast = self.dim, self.m, self.fpast
        geps2 = self.geps * self.geps
        feps = self.feps
        maxiter, maxls = self.maxiter, self.maxls

        x0 = jnp.asarray(x0_flat, jnp.float32).reshape(1, n)

        # initial objective / gradient / direction evaluation (one fused kernel)
        grad0, u0, scal0 = self._init_call(A, b2, x0)
        fx0 = scal0[0, 0]
        gg0 = scal0[0, 1]
        c0 = scal0[0, 2]
        uu0 = scal0[0, 3]
        x0sq = scal0[0, 4]
        gu0 = -c0                     # grad0 . u0   (u0 = -A grad0)
        dg00 = -gg0                   # grad0 . drt0 (drt0 = -grad0)
        gnorm0 = jnp.sqrt(gg0)
        step0 = jnp.where(gg0 > 0.0, 1.0 / gnorm0, jnp.float32(1.0))
        drt0 = -grad0
        early = (gg0 <= geps2) | (gg0 <= geps2 * x0sq)

        if fpast > 0:
            fxs0 = jnp.zeros((fpast,), jnp.float32).at[0].set(fx0)
        else:
            fxs0 = jnp.zeros((1,), jnp.float32)

        st0 = dict(
            k=jnp.asarray(1, jnp.int32),
            x=x0, grad=grad0, drt=drt0, u=u0,
            S=jnp.zeros((m, n), jnp.float32),
            Y=jnp.zeros((m, n), jnp.float32),
            ysinv=jnp.zeros((m,), jnp.float32),
            ncorr=jnp.asarray(0, jnp.int32),
            fx=fx0, gg=gg0, dg0=dg00, c=c0, gu=gu0, uu=uu0,
            step=step0.astype(jnp.float32),
            fxs=fxs0,
            done=early,
            status=jnp.asarray(0, jnp.int32),
            ret_iter=jnp.asarray(1, jnp.int32),
            gnorm=gnorm0,
        )

        def cond(st):
            return (~st['done']) & (st['k'] < maxiter)

        def body(st):
            k = st['k']
            # Wolfe line search on the exact 1-D quadratic restriction.
            step, fx_n, err = _line_search_quadratic(
                st['fx'], st['dg0'], st['c'], st['step'],
                maxls=maxls, wolfe_decr=self.wolfe_decr,
                wolfe_curv=self.wolfe_curv)
            gg_n = jnp.maximum(
                st['gg'] + 2.0 * step * st['gu'] + step * step * st['uu'], 0.0)
            gnorm_n = jnp.sqrt(gg_n)
            stop = (gg_n <= geps2) | (gg_n <= geps2 * x0sq) | (err != 0)

            fxs = st['fxs']
            if fpast > 0:
                idx = jnp.mod(k, fpast)
                fxd = fxs[idx]
                ftest = jnp.abs(fxd - fx_n) <= feps * jnp.maximum(
                    jnp.maximum(jnp.abs(fx_n), jnp.abs(fxd)), 1.0)
                stop = stop | ((k >= fpast) & ftest)
                fxs = fxs.at[idx].set(fx_n)

            # add_correction scalars, all closed form:
            #   s.y = step^2 * c, y.y = step^2 * uu  ->  1/theta = c / uu.
            ys = step * step * st['c']
            inv_theta = jnp.where(st['uu'] > 0.0, st['c'] / st['uu'],
                                  jnp.float32(1.0))
            ysinv_entry = jnp.where(ys > 0.0, 1.0 / ys, jnp.float32(0.0))
            ysinv_n = jnp.concatenate(
                [st['ysinv'][1:], jnp.reshape(ysinv_entry, (1,))])
            ncorr_n = jnp.minimum(st['ncorr'] + 1, m).astype(jnp.int32)

            iscal = jnp.reshape(ncorr_n, (1,))
            fscal = jnp.stack([step, inv_theta]).astype(jnp.float32)

            # one fused Pallas kernel per outer iteration (dead work when stopping)
            x_n, grad_n, drt_n, u_n, S_n, Y_n, scal = self._update_call(
                iscal, fscal, ysinv_n, A, st['x'], st['grad'], st['drt'],
                st['u'], st['S'], st['Y'])

            new = dict(st)
            new.update(
                k=k + 1,
                x=x_n, grad=grad_n, drt=drt_n, u=u_n,
                S=S_n, Y=Y_n, ysinv=ysinv_n, ncorr=ncorr_n,
                fx=fx_n, gg=gg_n,
                dg0=scal[0, 0], c=scal[0, 1], gu=scal[0, 2], uu=scal[0, 3],
                step=jnp.asarray(1.0, jnp.float32),
                fxs=fxs,
                done=stop,
                status=err,
                ret_iter=jnp.where(stop, k, k + 1),
                gnorm=gnorm_n,
            )
            return new

        stf = lax.while_loop(cond, body, st0)
        return (stf['x'].reshape((n,)), stf['ret_iter'], stf['gnorm'],
                stf['status'])

    # -- host entry point -----------------------------------------------------
    def forward(self, x0):
        x, it, gnorm, status = self._solve(
            jnp.asarray(x0, jnp.float32).reshape(-1), self._A, self._b)
        x = jax.block_until_ready(x)          # the single host<->device sync
        status = int(status)
        if status == 1:
            raise RuntimeError(
                'the moving direction increases the objective function value')
        if status == 2:
            raise RuntimeError('the line search routine failed, possibly due '
                               'to insufficient numeric precision')
        if self.verbose > 0:
            print(f'==> finished: iters = {int(it)}, ||grad|| = {float(gnorm)}')
        return x, int(it), float(gnorm)

    __call__ = forward


# ----------------------------------------------------------------------------
# Demo
# ----------------------------------------------------------------------------
if __name__ == "__main__":
    N = 128   # problem dimension (lane-aligned)
    M = 8     # L-BFGS memory size

    key = jax.random.PRNGKey(0)
    k1, k2, k3 = jax.random.split(key, 3)

    # well-conditioned symmetric positive-definite quadratic objective
    Mmat = jax.random.normal(k1, (N, N), dtype=jnp.float32)
    A = jnp.eye(N, dtype=jnp.float32) + 0.05 * (Mmat.T @ Mmat) / N
    b = jax.random.normal(k2, (N,), dtype=jnp.float32)
    x0 = jax.random.normal(k3, (N,), dtype=jnp.float32)

    solver = BFGSSolver(A, b, m=M, geps=1e-4, feps=1e-7,
                        maxiter=100, maxls=20, fpast=1, verbose=0)

    x_star, niter, gnorm = solver.forward(x0)
    x_star = jax.block_until_ready(x_star)

    # sanity check against the closed-form minimizer A^{-1} b
    x_ref = jnp.linalg.solve(A, b)
    max_err = float(jnp.max(jnp.abs(x_star - x_ref)))

    assert bool(jnp.all(jnp.isfinite(x_star)))
    assert niter >= 1 and gnorm < 1e-1, (niter, gnorm)
    assert max_err < 5e-2, max_err
    print("KERNEL_OK")
</pallas_src>

<mosaic_0001>
module attributes {stable_mosaic.version = 11 : i64} {
  func.func @_init_kernel(%arg0: memref<128x128xf32, #tpu.memory_space<vmem>>, %arg1: memref<1x128xf32, #tpu.memory_space<vmem>>, %arg2: memref<1x128xf32, #tpu.memory_space<vmem>>, %arg3: memref<1x128xf32, #tpu.memory_space<vmem>>, %arg4: memref<1x128xf32, #tpu.memory_space<vmem>>, %arg5: memref<1x128xf32, #tpu.memory_space<vmem>>) attributes {dimension_semantics = [], scalar_prefetch = 0 : i64, scratch_operands = 0 : i64, tpu.core_type = #tpu.core_type<tc>} {
    %c0 = arith.constant 0 : index
    %c0_0 = arith.constant 0 : index
    %0 = vector.load %arg2[%c0, %c0_0] : memref<1x128xf32, #tpu.memory_space<vmem>>, vector<1x128xf32>
    %c0_1 = arith.constant 0 : index
    %c0_2 = arith.constant 0 : index
    %1 = vector.load %arg0[%c0_1, %c0_2] : memref<128x128xf32, #tpu.memory_space<vmem>>, vector<128x128xf32>
    %c0_3 = arith.constant 0 : index
    %c0_4 = arith.constant 0 : index
    %2 = vector.load %arg1[%c0_3, %c0_4] : memref<1x128xf32, #tpu.memory_space<vmem>>, vector<1x128xf32>
    %cst = arith.constant dense<0.000000e+00> : vector<1x128xf32>
    %3 = tpu.matmul %0, %1, %cst {dimension_numbers = #tpu.dot_dimension_numbers<[1], [0], [0], [1], [0, 0, 1, 1], [], []>} : vector<1x128xf32>, vector<128x128xf32>, vector<1x128xf32> -> vector<1x128xf32>
    %4 = arith.subf %3, %2 : vector<1x128xf32>
    %c0_5 = arith.constant 0 : index
    %c0_6 = arith.constant 0 : index
    %5 = vector.load %arg3[%c0_5, %c0_6] : memref<1x128xf32, #tpu.memory_space<vmem>>, vector<1x128xf32>
    tpu.vector_store %arg3[%c0_5, %c0_6], %4 {strides = array<i32>} : memref<1x128xf32, #tpu.memory_space<vmem>>, vector<1x128xf32>,
    %cst_7 = arith.constant dense<0.000000e+00> : vector<1x128xf32>
    %6 = tpu.matmul %4, %1, %cst_7 {dimension_numbers = #tpu.dot_dimension_numbers<[1], [0], [0], [1], [0, 0, 1, 1], [], []>} : vector<1x128xf32>, vector<128x128xf32>, vector<1x128xf32> -> vector<1x128xf32>
    %cst_8 = arith.constant 0.000000e+00 : f32
    %7 = vector.broadcast %cst_8 : f32 to vector<1x128xf32>
    %8 = arith.subf %7, %6 : vector<1x128xf32>
    %c0_9 = arith.constant 0 : index
    %c0_10 = arith.constant 0 : index
    %9 = vector.load %arg4[%c0_9, %c0_10] : memref<1x128xf32, #tpu.memory_space<vmem>>, vector<1x128xf32>
    tpu.vector_store %arg4[%c0_9, %c0_10], %8 {strides = array<i32>} : memref<1x128xf32, #tpu.memory_space<vmem>>, vector<1x128xf32>,
    %cst_11 = arith.constant 0.000000e+00 : f32
    %10 = vector.broadcast %cst_11 : f32 to vector<1x128xf32>
    %c0_12 = arith.constant 0 : index
    %c0_13 = arith.constant 0 : index
    %11 = vector.load %arg5[%c0_12, %c0_13] : memref<1x128xf32, #tpu.memory_space<vmem>>, vector<1x128xf32>
    tpu.vector_store %arg5[%c0_12, %c0_13], %10 {strides = array<i32>} : memref<1x128xf32, #tpu.memory_space<vmem>>, vector<1x128xf32>,
    %12 = arith.mulf %0, %3 : vector<1x128xf32>
    %13 = vector.shape_cast %12 : vector<1x128xf32> to vector<1x1x128xf32>
    %cst_14 = arith.constant dense<0.000000e+00> : vector<1xf32>
    %14 = vector.multi_reduction <add>, %13, %cst_14 [1, 2] : vector<1x1x128xf32> to vector<1xf32>
    %15 = vector.shape_cast %14 : vector<1xf32> to vector<1x1x1xf32>
    %16 = vector.extract %15[0, 0, 0] : f32 from vector<1x1x1xf32>
    %17 = vector.broadcast %16 : f32 to vector<1x1xf32>
    %cst_15 = arith.constant 5.000000e-01 : f32
    %18 = vector.broadcast %cst_15 : f32 to vector<1x1xf32>
    %19 = arith.mulf %18, %17 : vector<1x1xf32>
    %20 = arith.mulf %0, %2 : vector<1x128xf32>
    %21 = vector.shape_cast %20 : vector<1x128xf32> to vector<1x1x128xf32>
    %cst_16 = arith.constant dense<0.000000e+00> : vector<1xf32>
    %22 = vector.multi_reduction <add>, %21, %cst_16 [1, 2] : vector<1x1x128xf32> to vector<1xf32>
    %23 = vector.shape_cast %22 : vector<1xf32> to vector<1x1x1xf32>
    %24 = vector.extract %23[0, 0, 0] : f32 from vector<1x1x1xf32>
    %25 = vector.broadcast %24 : f32 to vector<1x1xf32>
    %26 = arith.subf %19, %25 : vector<1x1xf32>
    %c0_17 = arith.constant 0 : index
    %c0_18 = arith.constant 0 : index
    %27 = vector.load %arg5[%c0_17, %c0_18] : memref<1x128xf32, #tpu.memory_space<vmem>>, vector<1x1xf32>
    tpu.vector_store %arg5[%c0_17, %c0_18], %26 {strides = array<i32>} : memref<1x128xf32, #tpu.memory_space<vmem>>, vector<1x1xf32>,
    %28 = arith.mulf %4, %4 : vector<1x128xf32>
    %29 = vector.shape_cast %28 : vector<1x128xf32> to vector<1x1x128xf32>
    %cst_19 = arith.constant dense<0.000000e+00> : vector<1xf32>
    %30 = vector.multi_reduction <add>, %29, %cst_19 [1, 2] : vector<1x1x128xf32> to vector<1xf32>
    %31 = vector.shape_cast %30 : vector<1xf32> to vector<1x1x1xf32>
    %32 = vector.extract %31[0, 0, 0] : f32 from vector<1x1x1xf32>
    %33 = vector.broadcast %32 : f32 to vector<1x1xf32>
    %c0_20 = arith.constant 0 : index
    %c1 = arith.constant 1 : index
    %34 = vector.load %arg5[%c0_20, %c1] : memref<1x128xf32, #tpu.memory_space<vmem>>, vector<1x1xf32>
    tpu.vector_store %arg5[%c0_20, %c1], %33 {strides = array<i32>} : memref<1x128xf32, #tpu.memory_space<vmem>>, vector<1x1xf32>,
    %35 = arith.mulf %4, %6 : vector<1x128xf32>
    %36 = vector.shape_cast %35 : vector<1x128xf32> to vector<1x1x128xf32>
    %cst_21 = arith.constant dense<0.000000e+00> : vector<1xf32>
    %37 = vector.multi_reduction <add>, %36, %cst_21 [1, 2] : vector<1x1x128xf32> to vector<1xf32>
    %38 = vector.shape_cast %37 : vector<1xf32> to vector<1x1x1xf32>
    %39 = vector.extract %38[0, 0, 0] : f32 from vector<1x1x1xf32>
    %40 = vector.broadcast %39 : f32 to vector<1x1xf32>
    %c0_22 = arith.constant 0 : index
    %c2 = arith.constant 2 : index
    %41 = vector.load %arg5[%c0_22, %c2] : memref<1x128xf32, #tpu.memory_space<vmem>>, vector<1x1xf32>
    tpu.vector_store %arg5[%c0_22, %c2], %40 {strides = array<i32>} : memref<1x128xf32, #tpu.memory_space<vmem>>, vector<1x1xf32>,
    %42 = arith.mulf %6, %6 : vector<1x128xf32>
    %43 = vector.shape_cast %42 : vector<1x128xf32> to vector<1x1x128xf32>
    %cst_23 = arith.constant dense<0.000000e+00> : vector<1xf32>
    %44 = vector.multi_reduction <add>, %43, %cst_23 [1, 2] : vector<1x1x128xf32> to vector<1xf32>
    %45 = vector.shape_cast %44 : vector<1xf32> to vector<1x1x1xf32>
    %46 = vector.extract %45[0, 0, 0] : f32 from vector<1x1x1xf32>
    %47 = vector.broadcast %46 : f32 to vector<1x1xf32>
    %c0_24 = arith.constant 0 : index
    %c3 = arith.constant 3 : index
    %48 = vector.load %arg5[%c0_24, %c3] : memref<1x128xf32, #tpu.memory_space<vmem>>, vector<1x1xf32>
    tpu.vector_store %arg5[%c0_24, %c3], %47 {strides = array<i32>} : memref<1x128xf32, #tpu.memory_space<vmem>>, vector<1x1xf32>,
    %49 = arith.mulf %0, %0 : vector<1x128xf32>
    %50 = vector.shape_cast %49 : vector<1x128xf32> to vector<1x1x128xf32>
    %cst_25 = arith.constant dense<0.000000e+00> : vector<1xf32>
    %51 = vector.multi_reduction <add>, %50, %cst_25 [1, 2] : vector<1x1x128xf32> to vector<1xf32>
    %52 = vector.shape_cast %51 : vector<1xf32> to vector<1x1x1xf32>
    %53 = vector.extract %52[0, 0, 0] : f32 from vector<1x1x1xf32>
    %54 = vector.broadcast %53 : f32 to vector<1x1xf32>
    %c0_26 = arith.constant 0 : index
    %c4 = arith.constant 4 : index
    %55 = vector.load %arg5[%c0_26, %c4] : memref<1x128xf32, #tpu.memory_space<vmem>>, vector<1x1xf32>
    tpu.vector_store %arg5[%c0_26, %c4], %54 {strides = array<i32>} : memref<1x128xf32, #tpu.memory_space<vmem>>, vector<1x1xf32>,
    return
  }
}

module attributes {stable_mosaic.version = 11 : i64} {
  func.func @_update_kernel(%arg0: memref<1xi32, #tpu.memory_space<smem>>, %arg1: memref<2xf32, #tpu.memory_space<smem>>, %arg2: memref<8xf32, #tpu.memory_space<smem>>, %arg3: memref<128x128xf32, #tpu.memory_space<vmem>>, %arg4: memref<1x128xf32, #tpu.memory_space<vmem>>, %arg5: memref<1x128xf32, #tpu.memory_space<vmem>>, %arg6: memref<1x128xf32, #tpu.memory_space<vmem>>, %arg7: memref<1x128xf32, #tpu.memory_space<vmem>>, %arg8: memref<8x128xf32, #tpu.memory_space<vmem>>, %arg9: memref<8x128xf32, #tpu.memory_space<vmem>>, %arg10: memref<1x128xf32, #tpu.memory_space<vmem>>, %arg11: memref<1x128xf32, #tpu.memory_space<vmem>>, %arg12: memref<1x128xf32, #tpu.memory_space<vmem>>, %arg13: memref<1x128xf32, #tpu.memory_space<vmem>>, %arg14: memref<8x128xf32, #tpu.memory_space<vmem>>, %arg15: memref<8x128xf32, #tpu.memory_space<vmem>>, %arg16: memref<1x128xf32, #tpu.memory_space<vmem>>) attributes {dimension_semantics = [], scalar_prefetch = 0 : i64, scratch_operands = 0 : i64, tpu.core_type = #tpu.core_type<tc>} {
    %c0 = arith.constant 0 : index
    %0 = memref.load %arg0[%c0] : memref<1xi32, #tpu.memory_space<smem>>
    %c0_0 = arith.constant 0 : index
    %1 = memref.load %arg1[%c0_0] : memref<2xf32, #tpu.memory_space<smem>>
    %c1 = arith.constant 1 : index
    %2 = memref.load %arg1[%c1] : memref<2xf32, #tpu.memory_space<smem>>
    %c0_1 = arith.constant 0 : index
    %c0_2 = arith.constant 0 : index
    %3 = vector.load %arg6[%c0_1, %c0_2] : memref<1x128xf32, #tpu.memory_space<vmem>>, vector<1x128xf32>
    %c0_3 = arith.constant 0 : index
    %c0_4 = arith.constant 0 : index
    %4 = vector.load %arg7[%c0_3, %c0_4] : memref<1x128xf32, #tpu.memory_space<vmem>>, vector<1x128xf32>
    %5 = vector.broadcast %1 : f32 to vector<1x128xf32>
    %6 = arith.mulf %5, %3 : vector<1x128xf32>
    %7 = vector.broadcast %1 : f32 to vector<1x128xf32>
    %8 = arith.mulf %7, %4 : vector<1x128xf32>
    %c0_5 = arith.constant 0 : index
    %c0_6 = arith.constant 0 : index
    %9 = vector.load %arg4[%c0_5, %c0_6] : memref<1x128xf32, #tpu.memory_space<vmem>>, vector<1x128xf32>
    %10 = arith.addf %9, %6 : vector<1x128xf32>
    %c0_7 = arith.constant 0 : index
    %c0_8 = arith.constant 0 : index
    %11 = vector.load %arg10[%c0_7, %c0_8] : memref<1x128xf32, #tpu.memory_space<vmem>>, vector<1x128xf32>
    tpu.vector_store %arg10[%c0_7, %c0_8], %10 {strides = array<i32>} : memref<1x128xf32, #tpu.memory_space<vmem>>, vector<1x128xf32>,
    %c0_9 = arith.constant 0 : index
    %c0_10 = arith.constant 0 : index
    %12 = vector.load %arg5[%c0_9, %c0_10] : memref<1x128xf32, #tpu.memory_space<vmem>>, vector<1x128xf32>
    %13 = arith.addf %12, %8 : vector<1x128xf32>
    %c0_11 = arith.constant 0 : index
    %c0_12 = arith.constant 0 : index
    %14 = vector.load %arg11[%c0_11, %c0_12] : memref<1x128xf32, #tpu.memory_space<vmem>>, vector<1x128xf32>
    tpu.vector_store %arg11[%c0_11, %c0_12], %13 {strides = array<i32>} : memref<1x128xf32, #tpu.memory_space<vmem>>, vector<1x128xf32>,
    %c1_13 = arith.constant 1 : index
    %c0_14 = arith.constant 0 : index
    %15 = vector.load %arg8[%c1_13, %c0_14] : memref<8x128xf32, #tpu.memory_space<vmem>>, vector<7x128xf32>
    %c1_15 = arith.constant 1 : index
    %c0_16 = arith.constant 0 : index
    %16 = vector.load %arg9[%c1_15, %c0_16] : memref<8x128xf32, #tpu.memory_space<vmem>>, vector<7x128xf32>
    %c0_17 = arith.constant 0 : index
    %c0_18 = arith.constant 0 : index
    %17 = vector.load %arg14[%c0_17, %c0_18] : memref<8x128xf32, #tpu.memory_space<vmem>>, vector<7x128xf32>
    tpu.vector_store %arg14[%c0_17, %c0_18], %15 {strides = array<i32>} : memref<8x128xf32, #tpu.memory_space<vmem>>, vector<7x128xf32>,
    %c0_19 = arith.constant 0 : index
    %c0_20 = arith.constant 0 : index
    %18 = vector.load %arg15[%c0_19, %c0_20] : memref<8x128xf32, #tpu.memory_space<vmem>>, vector<7x128xf32>
    tpu.vector_store %arg15[%c0_19, %c0_20], %16 {strides = array<i32>} : memref<8x128xf32, #tpu.memory_space<vmem>>, vector<7x128xf32>,
    %c7 = arith.constant 7 : index
    %c0_21 = arith.constant 0 : index
    %19 = vector.load %arg14[%c7, %c0_21] : memref<8x128xf32, #tpu.memory_space<vmem>>, vector<1x128xf32>
    tpu.vector_store %arg14[%c7, %c0_21], %6 {strides = array<i32>} : memref<8x128xf32, #tpu.memory_space<vmem>>, vector<1x128xf32>,
    %c7_22 = arith.constant 7 : index
    %c0_23 = arith.constant 0 : index
    %20 = vector.load %arg15[%c7_22, %c0_23] : memref<8x128xf32, #tpu.memory_space<vmem>>, vector<1x128xf32>
    tpu.vector_store %arg15[%c7_22, %c0_23], %8 {strides = array<i32>} : memref<8x128xf32, #tpu.memory_space<vmem>>, vector<1x128xf32>,
    %cst = arith.constant 0.000000e+00 : f32
    %21 = vector.broadcast %cst : f32 to vector<1x128xf32>
    %22 = arith.subf %21, %13 : vector<1x128xf32>
    %c0_i32 = arith.constant 0 : i32
    %23 = vector.broadcast %c0_i32 : i32 to vector<1x1xi32>
    %24 = vector.broadcast %0 : i32 to vector<1x1xi32>
    %25 = arith.cmpi slt, %23, %24 : vector<1x1xi32>
    %26 = arith.mulf %6, %22 : vector<1x128xf32>
    %27 = vector.shape_cast %26 : vector<1x128xf32> to vector<1x1x128xf32>
    %cst_24 = arith.constant dense<0.000000e+00> : vector<1xf32>
    %28 = vector.multi_reduction <add>, %27, %cst_24 [1, 2] : vector<1x1x128xf32> to vector<1xf32>
    %29 = vector.shape_cast %28 : vector<1xf32> to vector<1x1x1xf32>
    %30 = vector.extract %29[0, 0, 0] : f32 from vector<1x1x1xf32>
    %31 = vector.broadcast %30 : f32 to vector<1x1xf32>
    %c7_25 = arith.constant 7 : index
    %32 = memref.load %arg2[%c7_25] : memref<8xf32, #tpu.memory_space<smem>>
    %33 = vector.broadcast %32 : f32 to vector<1x1xf32>
    %34 = arith.mulf %31, %33 : vector<1x1xf32>
    %cst_26 = arith.constant 0.000000e+00 : f32
    %35 = vector.broadcast %cst_26 : f32 to vector<1x1xf32>
    %36 = arith.select %25, %34, %35 : vector<1x1xi1>, vector<1x1xf32>
    %37 = vector.broadcast %36 : vector<1x1xf32> to vector<1x128xf32>
    %38 = arith.mulf %37, %8 : vector<1x128xf32>
    %39 = arith.subf %22, %38 : vector<1x128xf32>
    %c1_i32 = arith.constant 1 : i32
    %40 = vector.broadcast %c1_i32 : i32 to vector<1x1xi32>
    %41 = vector.broadcast %0 : i32 to vector<1x1xi32>
    %42 = arith.cmpi slt, %40, %41 : vector<1x1xi32>
    %43 = vector.extract_strided_slice %15 {offsets = [6, 0], sizes = [1, 128], strides = [1, 1]} : vector<7x128xf32> to vector<1x128xf32>
    %44 = arith.mulf %43, %39 : vector<1x128xf32>
    %45 = vector.shape_cast %44 : vector<1x128xf32> to vector<1x1x128xf32>
    %cst_27 = arith.constant dense<0.000000e+00> : vector<1xf32>
    %46 = vector.multi_reduction <add>, %45, %cst_27 [1, 2] : vector<1x1x128xf32> to vector<1xf32>
    %47 = vector.shape_cast %46 : vector<1xf32> to vector<1x1x1xf32>
    %48 = vector.extract %47[0, 0, 0] : f32 from vector<1x1x1xf32>
    %49 = vector.broadcast %48 : f32 to vector<1x1xf32>
    %c6 = arith.constant 6 : index
    %50 = memref.load %arg2[%c6] : memref<8xf32, #tpu.memory_space<smem>>
    %51 = vector.broadcast %50 : f32 to vector<1x1xf32>
    %52 = arith.mulf %49, %51 : vector<1x1xf32>
    %cst_28 = arith.constant 0.000000e+00 : f32
    %53 = vector.broadcast %cst_28 : f32 to vector<1x1xf32>
    %54 = arith.select %42, %52, %53 : vector<1x1xi1>, vector<1x1xf32>
    %55 = vector.extract_strided_slice %16 {offsets = [6, 0], sizes = [1, 128], strides = [1, 1]} : vector<7x128xf32> to vector<1x128xf32>
    %56 = vector.broadcast %54 : vector<1x1xf32> to vector<1x128xf32>
    %57 = arith.mulf %56, %55 : vector<1x128xf32>
    %58 = arith.subf %39, %57 : vector<1x128xf32>
    %c2_i32 = arith.constant 2 : i32
    %59 = vector.broadcast %c2_i32 : i32 to vector<1x1xi32>
    %60 = vector.broadcast %0 : i32 to vector<1x1xi32>
    %61 = arith.cmpi slt, %59, %60 : vector<1x1xi32>
    %62 = vector.extract_strided_slice %15 {offsets = [5, 0], sizes = [1, 128], strides = [1, 1]} : vector<7x128xf32> to vector<1x128xf32>
    %63 = arith.mulf %62, %58 : vector<1x128xf32>
    %64 = vector.shape_cast %63 : vector<1x128xf32> to vector<1x1x128xf32>
    %cst_29 = arith.constant dense<0.000000e+00> : vector<1xf32>
    %65 = vector.multi_reduction <add>, %64, %cst_29 [1, 2] : vector<1x1x128xf32> to vector<1xf32>
    %66 = vector.shape_cast %65 : vector<1xf32> to vector<1x1x1xf32>
    %67 = vector.extract %66[0, 0, 0] : f32 from vector<1x1x1xf32>
    %68 = vector.broadcast %67 : f32 to vector<1x1xf32>
    %c5 = arith.constant 5 : index
    %69 = memref.load %arg2[%c5] : memref<8xf32, #tpu.memory_space<smem>>
    %70 = vector.broadcast %69 : f32 to vector<1x1xf32>
    %71 = arith.mulf %68, %70 : vector<1x1xf32>
    %cst_30 = arith.constant 0.000000e+00 : f32
    %72 = vector.broadcast %cst_30 : f32 to vector<1x1xf32>
    %73 = arith.select %61, %71, %72 : vector<1x1xi1>, vector<1x1xf32>
    %74 = vector.extract_strided_slice %16 {offsets = [5, 0], sizes = [1, 128], strides = [1, 1]} : vector<7x128xf32> to vector<1x128xf32>
    %75 = vector.broadcast %73 : vector<1x1xf32> to vector<1x128xf32>
    %76 = arith.mulf %75, %74 : vector<1x128xf32>
    %77 = arith.subf %58, %76 : vector<1x128xf32>
    %c3_i32 = arith.constant 3 : i32
    %78 = vector.broadcast %c3_i32 : i32 to vector<1x1xi32>
    %79 = vector.broadcast %0 : i32 to vector<1x1xi32>
    %80 = arith.cmpi slt, %78, %79 : vector<1x1xi32>
    %81 = vector.extract_strided_slice %15 {offsets = [4, 0], sizes = [1, 128], strides = [1, 1]} : vector<7x128xf32> to vector<1x128xf32>
    %82 = arith.mulf %81, %77 : vector<1x128xf32>
    %83 = vector.shape_cast %82 : vector<1x128xf32> to vector<1x1x128xf32>
    %cst_31 = arith.constant dense<0.000000e+00> : vector<1xf32>
    %84 = vector.multi_reduction <add>, %83, %cst_31 [1, 2] : vector<1x1x128xf32> to vector<1xf32>
    %85 = vector.shape_cast %84 : vector<1xf32> to vector<1x1x1xf32>
    %86 = vector.extract %85[0, 0, 0] : f32 from vector<1x1x1xf32>
    %87 = vector.broadcast %86 : f32 to vector<1x1xf32>
    %c4 = arith.constant 4 : index
    %88 = memref.load %arg2[%c4] : memref<8xf32, #tpu.memory_space<smem>>
    %89 = vector.broadcast %88 : f32 to vector<1x1xf32>
    %90 = arith.mulf %87, %89 : vector<1x1xf32>
    %cst_32 = arith.constant 0.000000e+00 : f32
    %91 = vector.broadcast %cst_32 : f32 to vector<1x1xf32>
    %92 = arith.select %80, %90, %91 : vector<1x1xi1>, vector<1x1xf32>
    %93 = vector.extract_strided_slice %16 {offsets = [4, 0], sizes = [1, 128], strides = [1, 1]} : vector<7x128xf32> to vector<1x128xf32>
    %94 = vector.broadcast %92 : vector<1x1xf32> to vector<1x128xf32>
    %95 = arith.mulf %94, %93 : vector<1x128xf32>
    %96 = arith.subf %77, %95 : vector<1x128xf32>
    %c4_i32 = arith.constant 4 : i32
    %97 = vector.broadcast %c4_i32 : i32 to vector<1x1xi32>
    %98 = vector.broadcast %0 : i32 to vector<1x1xi32>
    %99 = arith.cmpi slt, %97, %98 : vector<1x1xi32>
    %100 = vector.extract_strided_slice %15 {offsets = [3, 0], sizes = [1, 128], strides = [1, 1]} : vector<7x128xf32> to vector<1x128xf32>
    %101 = arith.mulf %100, %96 : vector<1x128xf32>
    %102 = vector.shape_cast %101 : vector<1x128xf32> to vector<1x1x128xf32>
    %cst_33 = arith.constant dense<0.000000e+00> : vector<1xf32>
    %103 = vector.multi_reduction <add>, %102, %cst_33 [1, 2] : vector<1x1x128xf32> to vector<1xf32>
    %104 = vector.shape_cast %103 : vector<1xf32> to vector<1x1x1xf32>
    %105 = vector.extract %104[0, 0, 0] : f32 from vector<1x1x1xf32>
    %106 = vector.broadcast %105 : f32 to vector<1x1xf32>
    %c3 = arith.constant 3 : index
    %107 = memref.load %arg2[%c3] : memref<8xf32, #tpu.memory_space<smem>>
    %108 = vector.broadcast %107 : f32 to vector<1x1xf32>
    %109 = arith.mulf %106, %108 : vector<1x1xf32>
    %cst_34 = arith.constant 0.000000e+00 : f32
    %110 = vector.broadcast %cst_34 : f32 to vector<1x1xf32>
    %111 = arith.select %99, %109, %110 : vector<1x1xi1>, vector<1x1xf32>
    %112 = vector.extract_strided_slice %16 {offsets = [3, 0], sizes = [1, 128], strides = [1, 1]} : vector<7x128xf32> to vector<1x128xf32>
    %113 = vector.broadcast %111 : vector<1x1xf32> to vector<1x128xf32>
    %114 = arith.mulf %113, %112 : vector<1x128xf32>
    %115 = arith.subf %96, %114 : vector<1x128xf32>
    %c5_i32 = arith.constant 5 : i32
    %116 = vector.broadcast %c5_i32 : i32 to vector<1x1xi32>
    %117 = vector.broadcast %0 : i32 to vector<1x1xi32>
    %118 = arith.cmpi slt, %116, %117 : vector<1x1xi32>
    %119 = vector.extract_strided_slice %15 {offsets = [2, 0], sizes = [1, 128], strides = [1, 1]} : vector<7x128xf32> to vector<1x128xf32>
    %120 = arith.mulf %119, %115 : vector<1x128xf32>
    %121 = vector.shape_cast %120 : vector<1x128xf32> to vector<1x1x128xf32>
    %cst_35 = arith.constant dense<0.000000e+00> : vector<1xf32>
    %122 = vector.multi_reduction <add>, %121, %cst_35 [1, 2] : vector<1x1x128xf32> to vector<1xf32>
    %123 = vector.shape_cast %122 : vector<1xf32> to vector<1x1x1xf32>
    %124 = vector.extract %123[0, 0, 0] : f32 from vector<1x1x1xf32>
    %125 = vector.broadcast %124 : f32 to vector<1x1xf32>
    %c2 = arith.constant 2 : index
    %126 = memref.load %arg2[%c2] : memref<8xf32, #tpu.memory_space<smem>>
    %127 = vector.broadcast %126 : f32 to vector<1x1xf32>
    %128 = arith.mulf %125, %127 : vector<1x1xf32>
    %cst_36 = arith.constant 0.000000e+00 : f32
    %129 = vector.broadcast %cst_36 : f32 to vector<1x1xf32>
    %130 = arith.select %118, %128, %129 : vector<1x1xi1>, vector<1x1xf32>
    %131 = vector.extract_strided_slice %16 {offsets = [2, 0], sizes = [1, 128], strides = [1, 1]} : vector<7x128xf32> to vector<1x128xf32>
    %132 = vector.broadcast %130 : vector<1x1xf32> to vector<1x128xf32>
    %133 = arith.mulf %132, %131 : vector<1x128xf32>
    %134 = arith.subf %115, %133 : vector<1x128xf32>
    %c6_i32 = arith.constant 6 : i32
    %135 = vector.broadcast %c6_i32 : i32 to vector<1x1xi32>
    %136 = vector.broadcast %0 : i32 to vector<1x1xi32>
    %137 = arith.cmpi slt, %135, %136 : vector<1x1xi32>
    %138 = vector.extract_strided_slice %15 {offsets = [1, 0], sizes = [1, 128], strides = [1, 1]} : vector<7x128xf32> to vector<1x128xf32>
    %139 = arith.mulf %138, %134 : vector<1x128xf32>
    %140 = vector.shape_cast %139 : vector<1x128xf32> to vector<1x1x128xf32>
    %cst_37 = arith.constant dense<0.000000e+00> : vector<1xf32>
    %141 = vector.multi_reduction <add>, %140, %cst_37 [1, 2] : vector<1x1x128xf32> to vector<1xf32>
    %142 = vector.shape_cast %141 : vector<1xf32> to vector<1x1x1xf32>
    %143 = vector.extract %142[0, 0, 0] : f32 from vector<1x1x1xf32>
    %144 = vector.broadcast %143 : f32 to vector<1x1xf32>
    %c1_38 = arith.constant 1 : index
    %145 = memref.load %arg2[%c1_38] : memref<8xf32, #tpu.memory_space<smem>>
    %146 = vector.broadcast %145 : f32 to vector<1x1xf32>
    %147 = arith.mulf %144, %146 : vector<1x1xf32>
    %cst_39 = arith.constant 0.000000e+00 : f32
    %148 = vector.broadcast %cst_39 : f32 to vector<1x1xf32>
    %149 = arith.select %137, %147, %148 : vector<1x1xi1>, vector<1x1xf32>
    %150 = vector.extract_strided_slice %16 {offsets = [1, 0], sizes = [1, 128], strides = [1, 1]} : vector<7x128xf32> to vector<1x128xf32>
    %151 = vector.broadcast %149 : vector<1x1xf32> to vector<1x128xf32>
    %152 = arith.mulf %151, %150 : vector<1x128xf32>
    %153 = arith.subf %134, %152 : vector<1x128xf32>
    %c7_i32 = arith.constant 7 : i32
    %154 = vector.broadcast %c7_i32 : i32 to vector<1x1xi32>
    %155 = vector.broadcast %0 : i32 to vector<1x1xi32>
    %156 = arith.cmpi slt, %154, %155 : vector<1x1xi32>
    %157 = vector.extract_strided_slice %15 {offsets = [0, 0], sizes = [1, 128], strides = [1, 1]} : vector<7x128xf32> to vector<1x128xf32>
    %158 = arith.mulf %157, %153 : vector<1x128xf32>
    %159 = vector.shape_cast %158 : vector<1x128xf32> to vector<1x1x128xf32>
    %cst_40 = arith.constant dense<0.000000e+00> : vector<1xf32>
    %160 = vector.multi_reduction <add>, %159, %cst_40 [1, 2] : vector<1x1x128xf32> to vector<1xf32>
    %161 = vector.shape_cast %160 : vector<1xf32> to vector<1x1x1xf32>
    %162 = vector.extract %161[0, 0, 0] : f32 from vector<1x1x1xf32>
    %163 = vector.broadcast %162 : f32 to vector<1x1xf32>
    %c0_41 = arith.constant 0 : index
    %164 = memref.load %arg2[%c0_41] : memref<8xf32, #tpu.memory_space<smem>>
    %165 = vector.broadcast %164 : f32 to vector<1x1xf32>
    %166 = arith.mulf %163, %165 : vector<1x1xf32>
    %cst_42 = arith.constant 0.000000e+00 : f32
    %167 = vector.broadcast %cst_42 : f32 to vector<1x1xf32>
    %168 = arith.select %156, %166, %167 : vector<1x1xi1>, vector<1x1xf32>
    %169 = vector.extract_strided_slice %16 {offsets = [0, 0], sizes = [1, 128], strides = [1, 1]} : vector<7x128xf32> to vector<1x128xf32>
    %170 = vector.broadcast %168 : vector<1x1xf32> to vector<1x128xf32>
    %171 = arith.mulf %170, %169 : vector<1x128xf32>
    %172 = arith.subf %153, %171 : vector<1x128xf32>
    %173 = vector.broadcast %2 : f32 to vector<1x128xf32>
    %174 = arith.mulf %172, %173 : vector<1x128xf32>
    %c7_i32_43 = arith.constant 7 : i32
    %175 = vector.broadcast %c7_i32_43 : i32 to vector<1x1xi32>
    %176 = vector.broadcast %0 : i32 to vector<1x1xi32>
    %177 = arith.cmpi slt, %175, %176 : vector<1x1xi32>
    %178 = vector.extract_strided_slice %16 {offsets = [0, 0], sizes = [1, 128], strides = [1, 1]} : vector<7x128xf32> to vector<1x128xf32>
    %179 = arith.mulf %178, %174 : vector<1x128xf32>
    %180 = vector.shape_cast %179 : vector<1x128xf32> to vector<1x1x128xf32>
    %cst_44 = arith.constant dense<0.000000e+00> : vector<1xf32>
    %181 = vector.multi_reduction <add>, %180, %cst_44 [1, 2] : vector<1x1x128xf32> to vector<1xf32>
    %182 = vector.shape_cast %181 : vector<1xf32> to vector<1x1x1xf32>
    %183 = vector.extract %182[0, 0, 0] : f32 from vector<1x1x1xf32>
    %184 = vector.broadcast %183 : f32 to vector<1x1xf32>
    %c0_45 = arith.constant 0 : index
    %185 = memref.load %arg2[%c0_45] : memref<8xf32, #tpu.memory_space<smem>>
    %186 = vector.broadcast %185 : f32 to vector<1x1xf32>
    %187 = arith.mulf %184, %186 : vector<1x1xf32>
    %188 = arith.subf %168, %187 : vector<1x1xf32>
    %cst_46 = arith.constant 0.000000e+00 : f32
    %189 = vector.broadcast %cst_46 : f32 to vector<1x1xf32>
    %190 = arith.select %177, %188, %189 : vector<1x1xi1>, vector<1x1xf32>
    %191 = vector.extract_strided_slice %15 {offsets = [0, 0], sizes = [1, 128], strides = [1, 1]} : vector<7x128xf32> to vector<1x128xf32>
    %192 = vector.broadcast %190 : vector<1x1xf32> to vector<1x128xf32>
    %193 = arith.mulf %192, %191 : vector<1x128xf32>
    %194 = arith.addf %174, %193 : vector<1x128xf32>
    %c6_i32_47 = arith.constant 6 : i32
    %195 = vector.broadcast %c6_i32_47 : i32 to vector<1x1xi32>
    %196 = vector.broadcast %0 : i32 to vector<1x1xi32>
    %197 = arith.cmpi slt, %195, %196 : vector<1x1xi32>
    %198 = vector.extract_strided_slice %16 {offsets = [1, 0], sizes = [1, 128], strides = [1, 1]} : vector<7x128xf32> to vector<1x128xf32>
    %199 = arith.mulf %198, %194 : vector<1x128xf32>
    %200 = vector.shape_cast %199 : vector<1x128xf32> to vector<1x1x128xf32>
    %cst_48 = arith.constant dense<0.000000e+00> : vector<1xf32>
    %201 = vector.multi_reduction <add>, %200, %cst_48 [1, 2] : vector<1x1x128xf32> to vector<1xf32>
    %202 = vector.shape_cast %201 : vector<1xf32> to vector<1x1x1xf32>
    %203 = vector.extract %202[0, 0, 0] : f32 from vector<1x1x1xf32>
    %204 = vector.broadcast %203 : f32 to vector<1x1xf32>
    %c1_49 = arith.constant 1 : index
    %205 = memref.load %arg2[%c1_49] : memref<8xf32, #tpu.memory_space<smem>>
    %206 = vector.broadcast %205 : f32 to vector<1x1xf32>
    %207 = arith.mulf %204, %206 : vector<1x1xf32>
    %208 = arith.subf %149, %207 : vector<1x1xf32>
    %cst_50 = arith.constant 0.000000e+00 : f32
    %209 = vector.broadcast %cst_50 : f32 to vector<1x1xf32>
    %210 = arith.select %197, %208, %209 : vector<1x1xi1>, vector<1x1xf32>
    %211 = vector.extract_strided_slice %15 {offsets = [1, 0], sizes = [1, 128], strides = [1, 1]} : vector<7x128xf32> to vector<1x128xf32>
    %212 = vector.broadcast %210 : vector<1x1xf32> to vector<1x128xf32>
    %213 = arith.mulf %212, %211 : vector<1x128xf32>
    %214 = arith.addf %194, %213 : vector<1x128xf32>
    %c5_i32_51 = arith.constant 5 : i32
    %215 = vector.broadcast %c5_i32_51 : i32 to vector<1x1xi32>
    %216 = vector.broadcast %0 : i32 to vector<1x1xi32>
    %217 = arith.cmpi slt, %215, %216 : vector<1x1xi32>
    %218 = vector.extract_strided_slice %16 {offsets = [2, 0], sizes = [1, 128], strides = [1, 1]} : vector<7x128xf32> to vector<1x128xf32>
    %219 = arith.mulf %218, %214 : vector<1x128xf32>
    %220 = vector.shape_cast %219 : vector<1x128xf32> to vector<1x1x128xf32>
    %cst_52 = arith.constant dense<0.000000e+00> : vector<1xf32>
    %221 = vector.multi_reduction <add>, %220, %cst_52 [1, 2] : vector<1x1x128xf32> to vector<1xf32>
    %222 = vector.shape_cast %221 : vector<1xf32> to vector<1x1x1xf32>
    %223 = vector.extract %222[0, 0, 0] : f32 from vector<1x1x1xf32>
    %224 = vector.broadcast %223 : f32 to vector<1x1xf32>
    %c2_53 = arith.constant 2 : index
    %225 = memref.load %arg2[%c2_53] : memref<8xf32, #tpu.memory_space<smem>>
    %226 = vector.broadcast %225 : f32 to vector<1x1xf32>
    %227 = arith.mulf %224, %226 : vector<1x1xf32>
    %228 = arith.subf %130, %227 : vector<1x1xf32>
    %cst_54 = arith.constant 0.000000e+00 : f32
    %229 = vector.broadcast %cst_54 : f32 to vector<1x1xf32>
    %230 = arith.select %217, %228, %229 : vector<1x1xi1>, vector<1x1xf32>
    %231 = vector.extract_strided_slice %15 {offsets = [2, 0], sizes = [1, 128], strides = [1, 1]} : vector<7x128xf32> to vector<1x128xf32>
    %232 = vector.broadcast %230 : vector<1x1xf32> to vector<1x128xf32>
    %233 = arith.mulf %232, %231 : vector<1x128xf32>
    %234 = arith.addf %214, %233 : vector<1x128xf32>
    %c4_i32_55 = arith.constant 4 : i32
    %235 = vector.broadcast %c4_i32_55 : i32 to vector<1x1xi32>
    %236 = vector.broadcast %0 : i32 to vector<1x1xi32>
    %237 = arith.cmpi slt, %235, %236 : vector<1x1xi32>
    %238 = vector.extract_strided_slice %16 {offsets = [3, 0], sizes = [1, 128], strides = [1, 1]} : vector<7x128xf32> to vector<1x128xf32>
    %239 = arith.mulf %238, %234 : vector<1x128xf32>
    %240 = vector.shape_cast %239 : vector<1x128xf32> to vector<1x1x128xf32>
    %cst_56 = arith.constant dense<0.000000e+00> : vector<1xf32>
    %241 = vector.multi_reduction <add>, %240, %cst_56 [1, 2] : vector<1x1x128xf32> to vector<1xf32>
    %242 = vector.shape_cast %241 : vector<1xf32> to vector<1x1x1xf32>
    %243 = vector.extract %242[0, 0, 0] : f32 from vector<1x1x1xf32>
    %244 = vector.broadcast %243 : f32 to vector<1x1xf32>
    %c3_57 = arith.constant 3 : index
    %245 = memref.load %arg2[%c3_57] : memref<8xf32, #tpu.memory_space<smem>>
    %246 = vector.broadcast %245 : f32 to vector<1x1xf32>
    %247 = arith.mulf %244, %246 : vector<1x1xf32>
    %248 = arith.subf %111, %247 : vector<1x1xf32>
    %cst_58 = arith.constant 0.000000e+00 : f32
    %249 = vector.broadcast %cst_58 : f32 to vector<1x1xf32>
    %250 = arith.select %237, %248, %249 : vector<1x1xi1>, vector<1x1xf32>
    %251 = vector.extract_strided_slice %15 {offsets = [3, 0], sizes = [1, 128], strides = [1, 1]} : vector<7x128xf32> to vector<1x128xf32>
    %252 = vector.broadcast %250 : vector<1x1xf32> to vector<1x128xf32>
    %253 = arith.mulf %252, %251 : vector<1x128xf32>
    %254 = arith.addf %234, %253 : vector<1x128xf32>
    %c3_i32_59 = arith.constant 3 : i32
    %255 = vector.broadcast %c3_i32_59 : i32 to vector<1x1xi32>
    %256 = vector.broadcast %0 : i32 to vector<1x1xi32>
    %257 = arith.cmpi slt, %255, %256 : vector<1x1xi32>
    %258 = vector.extract_strided_slice %16 {offsets = [4, 0], sizes = [1, 128], strides = [1, 1]} : vector<7x128xf32> to vector<1x128xf32>
    %259 = arith.mulf %258, %254 : vector<1x128xf32>
    %260 = vector.shape_cast %259 : vector<1x128xf32> to vector<1x1x128xf32>
    %cst_60 = arith.constant dense<0.000000e+00> : vector<1xf32>
    %261 = vector.multi_reduction <add>, %260, %cst_60 [1, 2] : vector<1x1x128xf32> to vector<1xf32>
    %262 = vector.shape_cast %261 : vector<1xf32> to vector<1x1x1xf32>
    %263 = vector.extract %262[0, 0, 0] : f32 from vector<1x1x1xf32>
    %264 = vector.broadcast %263 : f32 to vector<1x1xf32>
    %c4_61 = arith.constant 4 : index
    %265 = memref.load %arg2[%c4_61] : memref<8xf32, #tpu.memory_space<smem>>
    %266 = vector.broadcast %265 : f32 to vector<1x1xf32>
    %267 = arith.mulf %264, %266 : vector<1x1xf32>
    %268 = arith.subf %92, %267 : vector<1x1xf32>
    %cst_62 = arith.constant 0.000000e+00 : f32
    %269 = vector.broadcast %cst_62 : f32 to vector<1x1xf32>
    %270 = arith.select %257, %268, %269 : vector<1x1xi1>, vector<1x1xf32>
    %271 = vector.extract_strided_slice %15 {offsets = [4, 0], sizes = [1, 128], strides = [1, 1]} : vector<7x128xf32> to vector<1x128xf32>
    %272 = vector.broadcast %270 : vector<1x1xf32> to vector<1x128xf32>
    %273 = arith.mulf %272, %271 : vector<1x128xf32>
    %274 = arith.addf %254, %273 : vector<1x128xf32>
    %c2_i32_63 = arith.constant 2 : i32
    %275 = vector.broadcast %c2_i32_63 : i32 to vector<1x1xi32>
    %276 = vector.broadcast %0 : i32 to vector<1x1xi32>
    %277 = arith.cmpi slt, %275, %276 : vector<1x1xi32>
    %278 = vector.extract_strided_slice %16 {offsets = [5, 0], sizes = [1, 128], strides = [1, 1]} : vector<7x128xf32> to vector<1x128xf32>
    %279 = arith.mulf %278, %274 : vector<1x128xf32>
    %280 = vector.shape_cast %279 : vector<1x128xf32> to vector<1x1x128xf32>
    %cst_64 = arith.constant dense<0.000000e+00> : vector<1xf32>
    %281 = vector.multi_reduction <add>, %280, %cst_64 [1, 2] : vector<1x1x128xf32> to vector<1xf32>
    %282 = vector.shape_cast %281 : vector<1xf32> to vector<1x1x1xf32>
    %283 = vector.extract %282[0, 0, 0] : f32 from vector<1x1x1xf32>
    %284 = vector.broadcast %283 : f32 to vector<1x1xf32>
    %c5_65 = arith.constant 5 : index
    %285 = memref.load %arg2[%c5_65] : memref<8xf32, #tpu.memory_space<smem>>
    %286 = vector.broadcast %285 : f32 to vector<1x1xf32>
    %287 = arith.mulf %284, %286 : vector<1x1xf32>
    %288 = arith.subf %73, %287 : vector<1x1xf32>
    %cst_66 = arith.constant 0.000000e+00 : f32
    %289 = vector.broadcast %cst_66 : f32 to vector<1x1xf32>
    %290 = arith.select %277, %288, %289 : vector<1x1xi1>, vector<1x1xf32>
    %291 = vector.extract_strided_slice %15 {offsets = [5, 0], sizes = [1, 128], strides = [1, 1]} : vector<7x128xf32> to vector<1x128xf32>
    %292 = vector.broadcast %290 : vector<1x1xf32> to vector<1x128xf32>
    %293 = arith.mulf %292, %291 : vector<1x128xf32>
    %294 = arith.addf %274, %293 : vector<1x128xf32>
    %c1_i32_67 = arith.constant 1 : i32
    %295 = vector.broadcast %c1_i32_67 : i32 to vector<1x1xi32>
    %296 = vector.broadcast %0 : i32 to vector<1x1xi32>
    %297 = arith.cmpi slt, %295, %296 : vector<1x1xi32>
    %298 = vector.extract_strided_slice %16 {offsets = [6, 0], sizes = [1, 128], strides = [1, 1]} : vector<7x128xf32> to vector<1x128xf32>
    %299 = arith.mulf %298, %294 : vector<1x128xf32>
    %300 = vector.shape_cast %299 : vector<1x128xf32> to vector<1x1x128xf32>
    %cst_68 = arith.constant dense<0.000000e+00> : vector<1xf32>
    %301 = vector.multi_reduction <add>, %300, %cst_68 [1, 2] : vector<1x1x128xf32> to vector<1xf32>
    %302 = vector.shape_cast %301 : vector<1xf32> to vector<1x1x1xf32>
    %303 = vector.extract %302[0, 0, 0] : f32 from vector<1x1x1xf32>
    %304 = vector.broadcast %303 : f32 to vector<1x1xf32>
    %c6_69 = arith.constant 6 : index
    %305 = memref.load %arg2[%c6_69] : memref<8xf32, #tpu.memory_space<smem>>
    %306 = vector.broadcast %305 : f32 to vector<1x1xf32>
    %307 = arith.mulf %304, %306 : vector<1x1xf32>
    %308 = arith.subf %54, %307 : vector<1x1xf32>
    %cst_70 = arith.constant 0.000000e+00 : f32
    %309 = vector.broadcast %cst_70 : f32 to vector<1x1xf32>
    %310 = arith.select %297, %308, %309 : vector<1x1xi1>, vector<1x1xf32>
    %311 = vector.extract_strided_slice %15 {offsets = [6, 0], sizes = [1, 128], strides = [1, 1]} : vector<7x128xf32> to vector<1x128xf32>
    %312 = vector.broadcast %310 : vector<1x1xf32> to vector<1x128xf32>
    %313 = arith.mulf %312, %311 : vector<1x128xf32>
    %314 = arith.addf %294, %313 : vector<1x128xf32>
    %c0_i32_71 = arith.constant 0 : i32
    %315 = vector.broadcast %c0_i32_71 : i32 to vector<1x1xi32>
    %316 = vector.broadcast %0 : i32 to vector<1x1xi32>
    %317 = arith.cmpi slt, %315, %316 : vector<1x1xi32>
    %318 = arith.mulf %8, %314 : vector<1x128xf32>
    %319 = vector.shape_cast %318 : vector<1x128xf32> to vector<1x1x128xf32>
    %cst_72 = arith.constant dense<0.000000e+00> : vector<1xf32>
    %320 = vector.multi_reduction <add>, %319, %cst_72 [1, 2] : vector<1x1x128xf32> to vector<1xf32>
    %321 = vector.shape_cast %320 : vector<1xf32> to vector<1x1x1xf32>
    %322 = vector.extract %321[0, 0, 0] : f32 from vector<1x1x1xf32>
    %323 = vector.broadcast %322 : f32 to vector<1x1xf32>
    %c7_73 = arith.constant 7 : index
    %324 = memref.load %arg2[%c7_73] : memref<8xf32, #tpu.memory_space<smem>>
    %325 = vector.broadcast %324 : f32 to vector<1x1xf32>
    %326 = arith.mulf %323, %325 : vector<1x1xf32>
    %327 = arith.subf %36, %326 : vector<1x1xf32>
    %cst_74 = arith.constant 0.000000e+00 : f32
    %328 = vector.broadcast %cst_74 : f32 to vector<1x1xf32>
    %329 = arith.select %317, %327, %328 : vector<1x1xi1>, vector<1x1xf32>
    %330 = vector.broadcast %329 : vector<1x1xf32> to vector<1x128xf32>
    %331 = arith.mulf %330, %6 : vector<1x128xf32>
    %332 = arith.addf %314, %331 : vector<1x128xf32>
    %c0_75 = arith.constant 0 : index
    %c0_76 = arith.constant 0 : index
    %333 = vector.load %arg12[%c0_75, %c0_76] : memref<1x128xf32, #tpu.memory_space<vmem>>, vector<1x128xf32>
    tpu.vector_store %arg12[%c0_75, %c0_76], %332 {strides = array<i32>} : memref<1x128xf32, #tpu.memory_space<vmem>>, vector<1x128xf32>,
    %c0_77 = arith.constant 0 : index
    %c0_78 = arith.constant 0 : index
    %334 = vector.load %arg3[%c0_77, %c0_78] : memref<128x128xf32, #tpu.memory_space<vmem>>, vector<128x128xf32>
    %cst_79 = arith.constant dense<0.000000e+00> : vector<1x128xf32>
    %335 = tpu.matmul %332, %334, %cst_79 {dimension_numbers = #tpu.dot_dimension_numbers<[1], [0], [0], [1], [0, 0, 1, 1], [], []>} : vector<1x128xf32>, vector<128x128xf32>, vector<1x128xf32> -> vector<1x128xf32>
    %c0_80 = arith.constant 0 : index
    %c0_81 = arith.constant 0 : index
    %336 = vector.load %arg13[%c0_80, %c0_81] : memref<1x128xf32, #tpu.memory_space<vmem>>, vector<1x128xf32>
    tpu.vector_store %arg13[%c0_80, %c0_81], %335 {strides = array<i32>} : memref<1x128xf32, #tpu.memory_space<vmem>>, vector<1x128xf32>,
    %cst_82 = arith.constant 0.000000e+00 : f32
    %337 = vector.broadcast %cst_82 : f32 to vector<1x128xf32>
    %c0_83 = arith.constant 0 : index
    %c0_84 = arith.constant 0 : index
    %338 = vector.load %arg16[%c0_83, %c0_84] : memref<1x128xf32, #tpu.memory_space<vmem>>, vector<1x128xf32>
    tpu.vector_store %arg16[%c0_83, %c0_84], %337 {strides = array<i32>} : memref<1x128xf32, #tpu.memory_space<vmem>>, vector<1x128xf32>,
    %339 = arith.mulf %13, %332 : vector<1x128xf32>
    %340 = vector.shape_cast %339 : vector<1x128xf32> to vector<1x1x128xf32>
    %cst_85 = arith.constant dense<0.000000e+00> : vector<1xf32>
    %341 = vector.multi_reduction <add>, %340, %cst_85 [1, 2] : vector<1x1x128xf32> to vector<1xf32>
    %342 = vector.shape_cast %341 : vector<1xf32> to vector<1x1x1xf32>
    %343 = vector.extract %342[0, 0, 0] : f32 from vector<1x1x1xf32>
    %344 = vector.broadcast %343 : f32 to vector<1x1xf32>
    %c0_86 = arith.constant 0 : index
    %c0_87 = arith.constant 0 : index
    %345 = vector.load %arg16[%c0_86, %c0_87] : memref<1x128xf32, #tpu.memory_space<vmem>>, vector<1x1xf32>
    tpu.vector_store %arg16[%c0_86, %c0_87], %344 {strides = array<i32>} : memref<1x128xf32, #tpu.memory_space<vmem>>, vector<1x1xf32>,
    %346 = arith.mulf %332, %335 : vector<1x128xf32>
    %347 = vector.shape_cast %346 : vector<1x128xf32> to vector<1x1x128xf32>
    %cst_88 = arith.constant dense<0.000000e+00> : vector<1xf32>
    %348 = vector.multi_reduction <add>, %347, %cst_88 [1, 2] : vector<1x1x128xf32> to vector<1xf32>
    %349 = vector.shape_cast %348 : vector<1xf32> to vector<1x1x1xf32>
    %350 = vector.extract %349[0, 0, 0] : f32 from vector<1x1x1xf32>
    %351 = vector.broadcast %350 : f32 to vector<1x1xf32>
    %c0_89 = arith.constant 0 : index
    %c1_90 = arith.constant 1 : index
    %352 = vector.load %arg16[%c0_89, %c1_90] : memref<1x128xf32, #tpu.memory_space<vmem>>, vector<1x1xf32>
    tpu.vector_store %arg16[%c0_89, %c1_90], %351 {strides = array<i32>} : memref<1x128xf32, #tpu.memory_space<vmem>>, vector<1x1xf32>,
    %353 = arith.mulf %13, %335 : vector<1x128xf32>
    %354 = vector.shape_cast %353 : vector<1x128xf32> to vector<1x1x128xf32>
    %cst_91 = arith.constant dense<0.000000e+00> : vector<1xf32>
    %355 = vector.multi_reduction <add>, %354, %cst_91 [1, 2] : vector<1x1x128xf32> to vector<1xf32>
    %356 = vector.shape_cast %355 : vector<1xf32> to vector<1x1x1xf32>
    %357 = vector.extract %356[0, 0, 0] : f32 from vector<1x1x1xf32>
    %358 = vector.broadcast %357 : f32 to vector<1x1xf32>
    %c0_92 = arith.constant 0 : index
    %c2_93 = arith.constant 2 : index
    %359 = vector.load %arg16[%c0_92, %c2_93] : memref<1x128xf32, #tpu.memory_space<vmem>>, vector<1x1xf32>
    tpu.vector_store %arg16[%c0_92, %c2_93], %358 {strides = array<i32>} : memref<1x128xf32, #tpu.memory_space<vmem>>, vector<1x1xf32>,
    %360 = arith.mulf %335, %335 : vector<1x128xf32>
    %361 = vector.shape_cast %360 : vector<1x128xf32> to vector<1x1x128xf32>
    %cst_94 = arith.constant dense<0.000000e+00> : vector<1xf32>
    %362 = vector.multi_reduction <add>, %361, %cst_94 [1, 2] : vector<1x1x128xf32> to vector<1xf32>
    %363 = vector.shape_cast %362 : vector<1xf32> to vector<1x1x1xf32>
    %364 = vector.extract %363[0, 0, 0] : f32 from vector<1x1x1xf32>
    %365 = vector.broadcast %364 : f32 to vector<1x1xf32>
    %c0_95 = arith.constant 0 : index
    %c3_96 = arith.constant 3 : index
    %366 = vector.load %arg16[%c0_95, %c3_96] : memref<1x128xf32, #tpu.memory_space<vmem>>, vector<1x1xf32>
    tpu.vector_store %arg16[%c0_95, %c3_96], %365 {strides = array<i32>} : memref<1x128xf32, #tpu.memory_space<vmem>>, vector<1x1xf32>,
    return
  }
}

</mosaic_0001>

<bundles_post_ra>
// kernel: neg.5
= control target key start
LH: loop header
LB: loop body
LE: loop exit
PB: predicated region body
PF: predicated region fallthrough
CT: control target
= control target key end

     0   :  { %s24_s0 = inlined_call_operand.vmem [shape: f32[1,128], index: 0, kind: input, shape index: {}]   ;;  %s25_s1 = inlined_call_operand.vmem [shape: f32[1,128], index: 1, kind: output, shape index: {}]  }
   0x1   :  { %v2_v0 = vld [vmem:[%s24_s0] sm:$0x1] }
   0x2   :  { %v5_v1 = vxor.u32 2147483648, %v2_v0 }
   0x4   :  { %7 = vst [vmem:[%s25_s1] sm:$0x1] %v5_v1 }

// kernel: _solve_impl.1
= control target key start
LH: loop header
LB: loop body
LE: loop exit
PB: predicated region body
PF: predicated region fallthrough
CT: control target
= control target key end

     0   :  { %11 = vsyncpa [#allocation3], 0  ;;  %s352_s0 = inlined_call_operand.hbm [shape: f32[128,128], index: 0, kind: input, shape index: {}]   ;;  %s353_s1 = inlined_call_operand.hbm [shape: f32[1,128], index: 1, kind: input, shape index: {}]   ;;  %s354_s2 = inlined_call_operand.vmem [shape: f32[1,128], index: 2, kind: input, shape index: {}]   ;;  %s355_s3 = inlined_call_operand.vmem [shape: f32[1,128], index: 3, kind: output, shape index: {0}]   ;;  %s356_s4 = inlined_call_operand.vmem [shape: f32[1,128], index: 4, kind: output, shape index: {1}]   ;;  %s357_s5 = inlined_call_operand.vmem [shape: f32[1,128], index: 5, kind: output, shape index: {2}]  }
   0x1   :  { %s17_s20 = sshll.u32 %s352_s0, 4  ;;  %s18_s20 = int_to_ptr.hbm [resolvable:$true] %s17_s20 }
   0x2   :  { %12 = vsyncpa [#allocation5], 0  ;;  %s278_s21 = smov [#allocation2]   ;;  %s31_s25 = sshll.u32 %s353_s1, 4  ;;  %s32_s25 = int_to_ptr.hbm [resolvable:$true] %s31_s25 }
   0x3   :  { %s19_s22 = sshll.u32 %s278_s21, 4  ;;  %s279_s26 = smov 128   ;;  %s20_s22 = int_to_ptr.vmem [resolvable:$true] %s19_s22 }
   0x4   :  { %s280_s27 = smov 8   ;;  %s281_s28 = smov [#allocation4]  }
   0x5   :  { %25 = dma.hbm_to_vmem [thread:$0]  %s18_s20, 2048, %s20_s22, [#allocation3], %s279_s26, %s279_s26, %s280_s27  }
   0x6   :  { %s33_s29 = sshll.u32 %s281_s28, 4  ;;  %s34_s29 = int_to_ptr.vmem [resolvable:$true] %s33_s29 }
   0x7   :  { %36 = dma.hbm_to_vmem [thread:$0]  %s32_s25, 16, %s34_s29, [#allocation5]  }
   0x8   :  { %274 = dma.done.wait [#allocation3], 2048  }
   0x9   :  { %275 = vsyncadd [#allocation3], 4294965248 }
   0xa   :  { %276 = dma.done.wait [#allocation5], 16  }
   0xb   :  { %277 = vsyncadd [#allocation5], 4294967280  ;;  %v63_v0 = vld [vmem:[#allocation2 + $0x78] sm:$0xff]  ;;  %v62_v1 = vld [vmem:[#allocation2 + $0x70] sm:$0xff]  ;;  %vm111_vm0 = vcmask 1040384   ;;  %v282_v55 = vmov 0.0  }
   0xc   :  { %65 = vmatpush.msra.mxu0 %v63_v0  ;;  %87 = vmatpush.msra.mxu1 %v63_v0  ;;  %v61_v2 = vld [vmem:[#allocation2 + $0x68] sm:$0xff]  ;;  %v60_v3 = vld [vmem:[#allocation2 + $0x60] sm:$0xff]  ;;  %v59_v4 = vld [vmem:[#allocation2 + $0x58] sm:$0xff]  ;;  %109 = vst [vmem:[%s357_s5] sm:$0x1] %v282_v55  ;;  %vm137_vm1 = vcmask 0   ;;  %vm151_vm2 = vcmask 8200  }
   0xd   :  { %v58_v5 = vld [vmem:[#allocation2 + $0x50] sm:$0xff]  ;;  %v57_v6 = vld [vmem:[#allocation2 + $0x48] sm:$0xff]  ;;  %v56_v7 = vld [vmem:[#allocation2 + $0x40] sm:$0xff]  ;;  %vm165_vm3 = vcmask 16400   ;;  %vm179_vm4 = vcmask 24600   ;;  %vm193_vm5 = vcmask 32800  }
   0xe   :  { %66 = vmatpush.msra.mxu0 %v62_v1  ;;  %88 = vmatpush.msra.mxu1 %v62_v1  ;;  %v55_v8 = vld [vmem:[#allocation2 + $0x38] sm:$0xff]  ;;  %v54_v9 = vld [vmem:[#allocation2 + $0x30] sm:$0xff]  ;;  %v53_v10 = vld [vmem:[#allocation2 + $0x28] sm:$0xff] }
   0xf   :  { %v52_v11 = vld [vmem:[#allocation2 + $0x20] sm:$0xff]  ;;  %v51_v12 = vld [vmem:[#allocation2 + $0x18] sm:$0xff]  ;;  %v50_v13 = vld [vmem:[#allocation2 + $0x10] sm:$0xff] }
  0x10   :  { %67 = vmatpush.msra.mxu0 %v61_v2  ;;  %89 = vmatpush.msra.mxu1 %v61_v2  ;;  %v49_v14 = vld [vmem:[#allocation2 + $0x8] sm:$0xff]  ;;  %v48_v15 = vld [vmem:[#allocation2] sm:$0xff]  ;;  %v47_v16 = vld [vmem:[%s354_s2] sm:$0x1] }
  0x11   :  { %v64_v17 = vld [vmem:[#allocation4] sm:$0x1]  ;;  %v181_v48 = vmul.f32 %v47_v16, %v47_v16 }
  0x12   :  { %68 = vmatpush.msra.mxu0 %v60_v3  ;;  %90 = vmatpush.msra.mxu1 %v60_v3  ;;  %v124_v24 = vmul.f32 %v64_v17, %v47_v16 }
  0x13   :  { %v182_v52 = vsel %vm111_vm0, %v181_v48, 0.0 }
  0x14   :  { %69 = vmatpush.msra.mxu0 %v59_v4  ;;  %91 = vmatpush.msra.mxu1 %v59_v4  ;;  %v125_v25 = vsel %vm111_vm0, %v124_v24, 0.0 }
  0x16   :  { %70 = vmatpush.msra.mxu0 %v58_v5  ;;  %92 = vmatpush.msra.mxu1 %v58_v5 }
  0x18   :  { %71 = vmatpush.msra.mxu0 %v57_v6  ;;  %93 = vmatpush.msra.mxu1 %v57_v6 }
  0x1a   :  { %72 = vmatpush.msra.mxu0 %v56_v7  ;;  %94 = vmatpush.msra.mxu1 %v56_v7 }
  0x1c   :  { %73 = vmatpush.msra.mxu0 %v55_v8  ;;  %95 = vmatpush.msra.mxu1 %v55_v8 }
  0x1e   :  { %74 = vmatpush.msra.mxu0 %v54_v9  ;;  %96 = vmatpush.msra.mxu1 %v54_v9 }
  0x20   :  { %75 = vmatpush.msra.mxu0 %v53_v10  ;;  %97 = vmatpush.msra.mxu1 %v53_v10 }
  0x22   :  { %76 = vmatpush.msra.mxu0 %v52_v11  ;;  %98 = vmatpush.msra.mxu1 %v52_v11 }
  0x24   :  { %77 = vmatpush.msra.mxu0 %v51_v12  ;;  %99 = vmatpush.msra.mxu1 %v51_v12 }
  0x26   :  { %78 = vmatpush.msra.mxu0 %v50_v13  ;;  %100 = vmatpush.msra.mxu1 %v50_v13 }
  0x28   :  { %79 = vmatpush.msra.mxu0 %v49_v14  ;;  %101 = vmatpush.msra.mxu1 %v49_v14 }
  0x2a   :  { %80 = vmatpush.msra.mxu0 %v48_v15  ;;  %102 = vmatpush.msra.mxu1 %v48_v15 }
  0x2b   :  { %81 = vmatmul.f32.vlgmr.msra.gmra.mxu0 %v47_v16 }
  0xa8   :  { %v82_v18 = vpop.f32.mrf.mxu0 }
  0xa9   :  { %v85_v19 = vsub.f32 %v82_v18, %v64_v17  ;;  %v110_v20 = vmul.f32 %v82_v18, %v47_v16 }
  0xab   :  { %86 = vst [vmem:[%s355_s3] sm:$0x1] %v85_v19  ;;  %103 = vmatmul.f32.vlgmr.msra.gmra.mxu1 %v85_v19  ;;  %v112_v21 = vsel %vm111_vm0, %v110_v20, 0.0  ;;  %v139_v22 = vmul.f32 %v85_v19, %v85_v19 }
  0xac   :  { %113 = vadd.xlane.f32.xlu0 %v112_v21 }
  0xad   :  { %v140_v23 = vsel %vm111_vm0, %v139_v22, 0.0 }
  0xae   :  { %141 = vadd.xlane.f32.xlu1 %v140_v23 }
  0xb4   :  { %126 = vadd.xlane.f32.xlu0 %v125_v25 }
 0x11f   :  { %v114_v26 = vpop.xlane.xlu0 %113 }
 0x120   :  { %v115_v27 = vrot.slane %v114_v26, 4 }
 0x121   :  { %v142_v28 = vpop.xlane.xlu1 %141 }
 0x122   :  { %v116_v29 = vadd.f32 %v115_v27, %v114_v26  ;;  %v143_v30 = vrot.slane %v142_v28, 4 }
 0x124   :  { %v117_v31 = vrot.slane %v116_v29, 2  ;;  %v144_v32 = vadd.f32 %v143_v30, %v142_v28 }
 0x126   :  { %v118_v33 = vadd.f32 %v117_v31, %v116_v29  ;;  %v145_v34 = vrot.slane %v144_v32, 2 }
 0x127   :  { %v127_v35 = vpop.xlane.xlu0 %126 }
 0x128   :  { %v128_v36 = vrot.slane %v127_v35, 4  ;;  %v104_v37 = vpop.f32.mrf.mxu1  ;;  %v119_v38 = vrot.slane %v118_v33, 1  ;;  %v146_v46 = vadd.f32 %v145_v34, %v144_v32 }
 0x129   :  { %v107_v39 = vsub.f32 0.0, %v104_v37  ;;  %v153_v40 = vmul.f32 %v104_v37, %v85_v19  ;;  %v167_v41 = vmul.f32 %v104_v37, %v104_v37 }
 0x12a   :  { %v129_v42 = vadd.f32 %v128_v36, %v127_v35  ;;  %v120_v43 = vadd.f32 %v119_v38, %v118_v33  ;;  %v147_v50 = vrot.slane %v146_v46, 1 }
 0x12b   :  { %108 = vst [vmem:[%s356_s4] sm:$0x1] %v107_v39  ;;  %v168_v44 = vsel %vm111_vm0, %v167_v41, 0.0  ;;  %v154_v45 = vsel %vm111_vm0, %v153_v40, 0.0 }
 0x12c   :  { %v130_v47 = vrot.slane %v129_v42, 2  ;;  %209 = vpush %v120_v43  ;;  %169 = vadd.xlane.f32.xlu2 %v168_v44  ;;  %155 = vadd.xlane.f32.xlu1 %v154_v45  ;;  %v148_v54 = vadd.f32 %v147_v50, %v146_v46 }
 0x12e   :  { %v131_v49 = vadd.f32 %v130_v47, %v129_v42 }
 0x130   :  { %v132_v51 = vrot.slane %v131_v49, 1 }
 0x132   :  { %v133_v53 = vadd.f32 %v132_v51, %v131_v49 }
 0x134   :  { %211 = vpush %v133_v53  ;;  %183 = vadd.xlane.f32.xlu2 %v182_v52 }
 0x135   :  { %213 = vpush %v148_v54 }
 0x15d   :  { %s210_s8 = spop %209 }
 0x15e   :  { %v122_v56 = vstv %s210_s8 }
 0x15f   :  { %v123_v57 = vmul.f32 0.5, %v122_v56 }
 0x165   :  { %s212_s9 = spop %211 }
 0x166   :  { %v135_v58 = vstv %s212_s9  ;;  %s214_s10 = spop %213 }
 0x167   :  { %v136_v59 = vsub.f32 %v123_v57, %v135_v58  ;;  %v150_v60 = vstv %s214_s10 }
 0x169   :  { %138 = vst.msk [vmem:[%s357_s5] sm:$0x1] %vm137_vm1, %v136_v59 }
 0x16a   :  { %152 = vst.msk [vmem:[%s357_s5] sm:$0x1] %vm151_vm2, %v150_v60 }
 0x19f   :  { %v170_v61 = vpop.xlane.xlu2 %169  ;;  %v156_v62 = vpop.xlane.xlu1 %155 }
 0x1a0   :  { %v171_v63 = vrot.slane %v170_v61, 4  ;;  %v157_v0 = vrot.slane %v156_v62, 4 }
 0x1a2   :  { %v172_v1 = vadd.f32 %v171_v63, %v170_v61  ;;  %v158_v2 = vadd.f32 %v157_v0, %v156_v62 }
 0x1a4   :  { %v173_v3 = vrot.slane %v172_v1, 2  ;;  %v159_v4 = vrot.slane %v158_v2, 2 }
 0x1a6   :  { %v160_v5 = vadd.f32 %v159_v4, %v158_v2  ;;  %v174_v6 = vadd.f32 %v173_v3, %v172_v1 }
 0x1a7   :  { %v184_v7 = vpop.xlane.xlu2 %183 }
 0x1a8   :  { %v185_v8 = vrot.slane %v184_v7, 4  ;;  %v161_v9 = vrot.slane %v160_v5, 1  ;;  %v175_v10 = vrot.slane %v174_v6, 1 }
 0x1aa   :  { %v186_v11 = vadd.f32 %v185_v8, %v184_v7  ;;  %v162_v12 = vadd.f32 %v161_v9, %v160_v5  ;;  %v176_v13 = vadd.f32 %v175_v10, %v174_v6 }
 0x1ac   :  { %v187_v14 = vrot.slane %v186_v11, 2  ;;  %215 = vpush %v162_v12 }
 0x1ad   :  { %217 = vpush %v176_v13 }
 0x1ae   :  { %v188_v15 = vadd.f32 %v187_v14, %v186_v11 }
 0x1b0   :  { %v189_v16 = vrot.slane %v188_v15, 1 }
 0x1b2   :  { %v190_v17 = vadd.f32 %v189_v16, %v188_v15 }
 0x1b4   :  { %219 = vpush %v190_v17 }
 0x1dd   :  { %s216_s15 = spop %215 }
 0x1de   :  { %v164_v18 = vstv %s216_s15  ;;  %s218_s16 = spop %217 }
 0x1df   :  { %166 = vst.msk [vmem:[%s357_s5] sm:$0x1] %vm165_vm3, %v164_v18  ;;  %v178_v19 = vstv %s218_s16 }
 0x1e0   :  { %180 = vst.msk [vmem:[%s357_s5] sm:$0x1] %vm179_vm4, %v178_v19 }
 0x1e5   :  { %s220_s21 = spop %219 }
 0x1e6   :  { %v192_v20 = vstv %s220_s21 }
 0x1e7   :  { %194 = vst.msk [vmem:[%s357_s5] sm:$0x1] %vm193_vm5, %v192_v20 }
 0x1e8   :  { %207 = vsyncpa [#allocation3], 1 }
 0x1e9   :  { %208 = vsyncpa [#allocation5], 1 }

// kernel: body.10
= control target key start
LH: loop header
LB: loop body
LE: loop exit
PB: predicated region body
PF: predicated region fallthrough
CT: control target
= control target key end

     0   :  { %s1110_s0 = inlined_call_operand.<no memory space> [shape: s32[1], index: 0, kind: input, shape index: {}]   ;;  %s1111_s1 = inlined_call_operand.vmem [shape: f32[2], index: 1, kind: input, shape index: {}]   ;;  %s1112_s2 = inlined_call_operand.vmem [shape: f32[8], index: 2, kind: input, shape index: {}]   ;;  %s1113_s3 = inlined_call_operand.vmem [shape: f32[128,128], index: 3, kind: input, shape index: {}]   ;;  %s1114_s4 = inlined_call_operand.vmem [shape: f32[1,128], index: 4, kind: input, shape index: {}]   ;;  %s1115_s5 = inlined_call_operand.vmem [shape: f32[1,128], index: 5, kind: input, shape index: {}]   ;;  %s1116_s6 = inlined_call_operand.vmem [shape: f32[1,128], index: 6, kind: input, shape index: {}]   ;;  %s1117_s7 = inlined_call_operand.vmem [shape: f32[1,128], index: 7, kind: input, shape index: {}]   ;;  %s1118_s8 = inlined_call_operand.vmem [shape: f32[8,128], index: 8, kind: input, shape index: {}]   ;;  %s1119_s9 = inlined_call_operand.vmem [shape: f32[8,128], index: 9, kind: input, shape index: {}]   ;;  %s1120_s10 = inlined_call_operand.vmem [shape: f32[1,128], index: 10, kind: output, shape index: {0}]   ;;  %s1121_s11 = inlined_call_operand.vmem [shape: f32[1,128], index: 11, kind: output, shape index: {1}]   ;;  %s1122_s12 = inlined_call_operand.vmem [shape: f32[1,128], index: 12, kind: output, shape index: {2}]   ;;  %s1123_s13 = inlined_call_operand.vmem [shape: f32[1,128], index: 13, kind: output, shape index: {3}]   ;;  %s1124_s14 = inlined_call_operand.vmem [shape: f32[8,128], index: 14, kind: output, shape index: {4}]   ;;  %s1125_s15 = inlined_call_operand.vmem [shape: f32[8,128], index: 15, kind: output, shape index: {5}]   ;;  %s1126_s16 = inlined_call_operand.vmem [shape: f32[1,128], index: 16, kind: output, shape index: {6}]  }
   0x1   :  { %1127 = sst [smem:[#allocation9_spill]] %s1110_s0 }
   0x2   :  { %23 = vsyncpa [#allocation4], 0  ;;  %s32_s23 = sshll.u32 %s1111_s1, 4  ;;  %s33_s23 = int_to_ptr.vmem [resolvable:$true] %s32_s23 }
   0x3   :  { %24 = vsyncpa [#allocation6], 0  ;;  %s41_s26 = sshll.u32 %s1112_s2, 4  ;;  %s717_s27 = smov [#allocation3]   ;;  %s42_s26 = int_to_ptr.vmem [resolvable:$true] %s41_s26 }
   0x4   :  { %35 = dma.vmem_to_smem %s33_s23, 16, %s717_s27, [#allocation4]  }
   0x5   :  { %s718_s28 = smov [#allocation5]  }
   0x6   :  { %44 = dma.vmem_to_smem %s42_s26, 16, %s718_s28, [#allocation6]  }
   0x7   :  { %713 = dma.done.wait [#allocation4], 16  }
   0x8   :  { %714 = vsyncadd [#allocation4], 4294967280 }
   0x9   :  { %715 = dma.done.wait [#allocation6], 16  }
   0xa   :  { %716 = vsyncadd [#allocation6], 4294967280 }
   0xb   :  { %67 = sfence }
   0xc   :  { %s69_s29 = sld [smem:[#allocation3]]  ;;  %v71_v0 = vld [vmem:[%s1116_s6] sm:$0x1]  ;;  %vm92_vm0 = vcmask 1040384   ;;  %v852_v19 = vld [vmem:[%s1118_s8 + $0x1] sm:$0x7f] }
   0xd   :  { %v72_v1 = vld [vmem:[%s1117_s7] sm:$0x1]  ;;  %84 = vst [vmem:[%s1124_s14] sm:$0x7f] %v852_v19  ;;  %s858_s27 = sld [smem:[#allocation5 + $0x7]]  ;;  %v880_v31 = vld [vmem:[%s1119_s9 + $0x1] sm:$0x7f] }
   0xe   :  { %v76_v3 = vld [vmem:[%s1114_s4] sm:$0x1]  ;;  %s1128_s30 = sld [smem:[#allocation9_spill]]  ;;  %85 = vst [vmem:[%s1125_s15] sm:$0x7f] %v880_v31  ;;  %vm564_vm9 = vcmask 0   ;;  %vm578_vm10 = vcmask 8200  }
   0xf   :  { %v79_v4 = vld [vmem:[%s1115_s5] sm:$0x1]  ;;  %s886_s2 = sld [smem:[#allocation5 + $0x6]]  ;;  %vm592_vm11 = vcmask 16400   ;;  %vm606_vm12 = vcmask 24600  }
  0x10   :  { %s914_s19 = sld [smem:[#allocation5 + $0x4]] }
  0x11   :  { %s928_s6 = sld [smem:[#allocation5 + $0x3]] }
  0x12   :  { %v73_v2 = vstv %s69_s29  ;;  %s942_s4 = sld [smem:[#allocation5 + $0x2]] }
  0x13   :  { %v823_v5 = vmul.f32 %v73_v2, %v71_v0  ;;  %v825_v6 = vmul.f32 %v73_v2, %v72_v1  ;;  %v105_v21 = vstv %s858_s27  ;;  %s956_s5 = sld [smem:[#allocation5 + $0x1]] }
  0x14   :  { %v863_v20 = vstv %s1128_s30  ;;  %s303_s23 = sld [smem:[#allocation5]] }
  0x15   :  { %v828_v7 = vadd.f32 %v79_v4, %v825_v6  ;;  %87 = vst [vmem:[%s1125_s15 + $0x7] sm:$0x1] %v825_v6  ;;  %v77_v8 = vadd.f32 %v76_v3, %v823_v5  ;;  %vm90_vm1 = vcmp.gt.s32.totalorder %v863_v20, 0  ;;  %v130_v39 = vstv %s886_s2  ;;  %s900_s15 = sld [smem:[#allocation5 + $0x5]] }
  0x16   :  { %86 = vst [vmem:[%s1124_s14 + $0x7] sm:$0x1] %v823_v5  ;;  %vm110_vm2 = vcmp.gt.s32.totalorder %v863_v20, 1  ;;  %vm140_vm3 = vcmp.gt.s32.totalorder %v863_v20, 2  ;;  %vm170_vm4 = vcmp.gt.s32.totalorder %v863_v20, 3  ;;  %vm200_vm5 = vcmp.gt.s32.totalorder %v863_v20, 4 }
  0x17   :  { %81 = vst [vmem:[%s1121_s11] sm:$0x1] %v828_v7  ;;  %v88_v9 = vsub.f32 0.0, %v828_v7  ;;  %vm230_vm6 = vcmp.gt.s32.totalorder %v863_v20, 5  ;;  %vm260_vm7 = vcmp.gt.s32.totalorder %v863_v20, 6  ;;  %s638_s24 = sld [smem:[#allocation3 + $0x1]]  ;;  %vm290_vm8 = vcmp.gt.s32.totalorder %v863_v20, 7 }
  0x18   :  { %78 = vst [vmem:[%s1120_s10] sm:$0x1] %v77_v8 }
  0x19   :  { %v91_v10 = vmul.f32 %v88_v9, %v823_v5 }
  0x1b   :  { %v93_v11 = vsel %vm92_vm0, %v91_v10, 0.0  ;;  %v160_v57 = vstv %s900_s15 }
  0x1c   :  { %94 = vadd.xlane.f32.xlu0 %v93_v11 }
  0x8f   :  { %v95_v12 = vpop.xlane.xlu0 %94 }
  0x90   :  { %v96_v13 = vrot.slane %v95_v12, 4 }
  0x92   :  { %v97_v14 = vadd.f32 %v96_v13, %v95_v12 }
  0x94   :  { %v98_v15 = vrot.slane %v97_v14, 2 }
  0x96   :  { %v99_v16 = vadd.f32 %v98_v15, %v97_v14  ;;  %v190_v14 = vstv %s914_s19 }
  0x98   :  { %v100_v17 = vrot.slane %v99_v16, 1 }
  0x9a   :  { %v101_v18 = vadd.f32 %v100_v17, %v99_v16 }
  0x9c   :  { %646 = vpush %v101_v18 }
  0xcd   :  { %s647_s0 = spop %646 }
  0xce   :  { %v103_v22 = vstv %s647_s0 }
  0xcf   :  { %v106_v23 = vmul.f32 %v105_v21, %v103_v22 }
  0xd1   :  { %v871_v24 = vsel %vm90_vm1, %v106_v23, 0.0 }
  0xd2   :  { %v108_v25 = vmul.f32 %v871_v24, %v825_v6 }
  0xd4   :  { %v109_v26 = vsub.f32 %v88_v9, %v108_v25 }
  0xd6   :  { %v112_v27 = vperm.slane %v109_v26, 0 }
  0xd8   :  { %v114_v28 = vmul.f32 %v112_v27, %v852_v19 }
  0xda   :  { %v116_v29 = vrot.slane %v114_v28, 6 }
  0xdc   :  { %v118_v30 = vsel %vm92_vm0, %v116_v29, 0.0 }
  0xdd   :  { %119 = vadd.xlane.f32.xlu0 %v118_v30 }
 0x150   :  { %v120_v32 = vpop.xlane.xlu0 %119 }
 0x151   :  { %v121_v33 = vrot.slane %v120_v32, 4 }
 0x153   :  { %v122_v34 = vadd.f32 %v121_v33, %v120_v32 }
 0x155   :  { %v123_v35 = vrot.slane %v122_v34, 2 }
 0x157   :  { %v124_v36 = vadd.f32 %v123_v35, %v122_v34 }
 0x159   :  { %v125_v37 = vrot.slane %v124_v36, 1 }
 0x15b   :  { %v126_v38 = vadd.f32 %v125_v37, %v124_v36  ;;  %v220_v37 = vstv %s928_s6 }
 0x15d   :  { %648 = vpush %v126_v38 }
 0x18e   :  { %s649_s9 = spop %648 }
 0x18f   :  { %v128_v40 = vstv %s649_s9 }
 0x190   :  { %v131_v41 = vmul.f32 %v130_v39, %v128_v40 }
 0x192   :  { %v894_v42 = vsel %vm110_vm2, %v131_v41, 0.0 }
 0x193   :  { %v133_v43 = vmul.f32 %v894_v42, %v880_v31 }
 0x195   :  { %135 = vst [vmem:[#allocation1] sm:$0xff] %v133_v43 }
 0x19c   :  { %v137_v44 = vld [vmem:[#allocation1 + $0x6] ss:$9 sm:$0xff] }
 0x19d   :  { %v139_v45 = vsub.f32 %v109_v26, %v137_v44 }
 0x19f   :  { %v142_v46 = vperm.slane %v139_v45, 0 }
 0x1a1   :  { %v144_v47 = vmul.f32 %v142_v46, %v852_v19 }
 0x1a3   :  { %v146_v48 = vrot.slane %v144_v47, 5 }
 0x1a5   :  { %v148_v49 = vsel %vm92_vm0, %v146_v48, 0.0 }
 0x1a6   :  { %149 = vadd.xlane.f32.xlu1 %v148_v49 }
 0x219   :  { %v150_v50 = vpop.xlane.xlu1 %149 }
 0x21a   :  { %v151_v51 = vrot.slane %v150_v50, 4 }
 0x21c   :  { %v152_v52 = vadd.f32 %v151_v51, %v150_v50 }
 0x21e   :  { %v153_v53 = vrot.slane %v152_v52, 2 }
 0x220   :  { %v154_v54 = vadd.f32 %v153_v53, %v152_v52 }
 0x222   :  { %v155_v55 = vrot.slane %v154_v54, 1 }
 0x224   :  { %v156_v56 = vadd.f32 %v155_v55, %v154_v54 }
 0x226   :  { %650 = vpush %v156_v56 }
 0x257   :  { %s651_s18 = spop %650 }
 0x258   :  { %v158_v58 = vstv %s651_s18 }
 0x259   :  { %v161_v59 = vmul.f32 %v160_v57, %v158_v58  ;;  %v250_v58 = vstv %s942_s4 }
 0x25b   :  { %v908_v60 = vsel %vm140_vm3, %v161_v59, 0.0 }
 0x25c   :  { %v163_v61 = vmul.f32 %v908_v60, %v880_v31 }
 0x25e   :  { %165 = vst [vmem:[#allocation1] sm:$0xff] %v163_v61 }
 0x265   :  { %v167_v62 = vld [vmem:[#allocation1 + $0x5] ss:$9 sm:$0xff] }
 0x266   :  { %v169_v63 = vsub.f32 %v139_v45, %v167_v62 }
 0x268   :  { %v172_v0 = vperm.slane %v169_v63, 0 }
 0x26a   :  { %v174_v1 = vmul.f32 %v172_v0, %v852_v19 }
 0x26c   :  { %v176_v2 = vrot.slane %v174_v1, 4 }
 0x26e   :  { %v178_v3 = vsel %vm92_vm0, %v176_v2, 0.0 }
 0x26f   :  { %179 = vadd.xlane.f32.xlu1 %v178_v3 }
 0x2e2   :  { %v180_v4 = vpop.xlane.xlu1 %179 }
 0x2e3   :  { %v181_v8 = vrot.slane %v180_v4, 4 }
 0x2e5   :  { %v182_v9 = vadd.f32 %v181_v8, %v180_v4 }
 0x2e7   :  { %v183_v10 = vrot.slane %v182_v9, 2 }
 0x2e9   :  { %v184_v11 = vadd.f32 %v183_v10, %v182_v9 }
 0x2eb   :  { %v185_v12 = vrot.slane %v184_v11, 1 }
 0x2ed   :  { %v186_v13 = vadd.f32 %v185_v12, %v184_v11 }
 0x2ef   :  { %652 = vpush %v186_v13 }
 0x320   :  { %s653_s20 = spop %652 }
 0x321   :  { %v188_v15 = vstv %s653_s20 }
 0x322   :  { %v191_v16 = vmul.f32 %v190_v14, %v188_v15 }
 0x324   :  { %v922_v17 = vsel %vm170_vm4, %v191_v16, 0.0 }
 0x325   :  { %v193_v18 = vmul.f32 %v922_v17, %v880_v31 }
 0x327   :  { %195 = vst [vmem:[#allocation1] sm:$0xff] %v193_v18  ;;  %v280_v18 = vstv %s956_s5 }
 0x32e   :  { %v197_v22 = vld [vmem:[#allocation1 + $0x4] ss:$9 sm:$0xff] }
 0x32f   :  { %v199_v23 = vsub.f32 %v169_v63, %v197_v22 }
 0x331   :  { %v202_v25 = vperm.slane %v199_v23, 0 }
 0x333   :  { %v204_v26 = vmul.f32 %v202_v25, %v852_v19 }
 0x335   :  { %v206_v27 = vrot.slane %v204_v26, 3 }
 0x337   :  { %v208_v28 = vsel %vm92_vm0, %v206_v27, 0.0 }
 0x338   :  { %209 = vadd.xlane.f32.xlu2 %v208_v28 }
 0x3ab   :  { %v210_v29 = vpop.xlane.xlu2 %209 }
 0x3ac   :  { %v211_v30 = vrot.slane %v210_v29, 4 }
 0x3ae   :  { %v212_v32 = vadd.f32 %v211_v30, %v210_v29 }
 0x3b0   :  { %v213_v33 = vrot.slane %v212_v32, 2 }
 0x3b2   :  { %v214_v34 = vadd.f32 %v213_v33, %v212_v32 }
 0x3b4   :  { %v215_v35 = vrot.slane %v214_v34, 1 }
 0x3b6   :  { %v216_v36 = vadd.f32 %v215_v35, %v214_v34 }
 0x3b8   :  { %654 = vpush %v216_v36 }
 0x3e9   :  { %s655_s21 = spop %654 }
 0x3ea   :  { %v218_v38 = vstv %s655_s21 }
 0x3eb   :  { %v221_v40 = vmul.f32 %v220_v37, %v218_v38 }
 0x3ed   :  { %v936_v41 = vsel %vm200_vm5, %v221_v40, 0.0 }
 0x3ee   :  { %v223_v43 = vmul.f32 %v936_v41, %v880_v31 }
 0x3f0   :  { %225 = vst [vmem:[#allocation1] sm:$0xff] %v223_v43  ;;  %v304_v43 = vstv %s303_s23 }
 0x3f7   :  { %v227_v44 = vld [vmem:[#allocation1 + $0x3] ss:$9 sm:$0xff] }
 0x3f8   :  { %v229_v45 = vsub.f32 %v199_v23, %v227_v44 }
 0x3fa   :  { %v232_v46 = vperm.slane %v229_v45, 0 }
 0x3fc   :  { %v234_v47 = vmul.f32 %v232_v46, %v852_v19 }
 0x3fe   :  { %v236_v48 = vrot.slane %v234_v47, 2 }
 0x400   :  { %v238_v49 = vsel %vm92_vm0, %v236_v48, 0.0  ;;  %v309_v48 = vstv %s638_s24 }
 0x401   :  { %239 = vadd.xlane.f32.xlu2 %v238_v49 }
 0x474   :  { %v240_v50 = vpop.xlane.xlu2 %239 }
 0x475   :  { %v241_v51 = vrot.slane %v240_v50, 4 }
 0x477   :  { %v242_v52 = vadd.f32 %v241_v51, %v240_v50 }
 0x479   :  { %v243_v53 = vrot.slane %v242_v52, 2 }
 0x47b   :  { %v244_v54 = vadd.f32 %v243_v53, %v242_v52 }
 0x47d   :  { %v245_v55 = vrot.slane %v244_v54, 1 }
 0x47f   :  { %v246_v56 = vadd.f32 %v245_v55, %v244_v54 }
 0x481   :  { %656 = vpush %v246_v56 }
 0x4b2   :  { %s657_s7 = spop %656 }
 0x4b3   :  { %v248_v59 = vstv %s657_s7 }
 0x4b4   :  { %v251_v61 = vmul.f32 %v250_v58, %v248_v59 }
 0x4b6   :  { %v950_v62 = vsel %vm230_vm6, %v251_v61, 0.0 }
 0x4b7   :  { %v253_v63 = vmul.f32 %v950_v62, %v880_v31 }
 0x4b9   :  { %255 = vst [vmem:[#allocation1] sm:$0xff] %v253_v63 }
 0x4c0   :  { %v257_v0 = vld [vmem:[#allocation1 + $0x2] ss:$9 sm:$0xff] }
 0x4c1   :  { %v259_v1 = vsub.f32 %v229_v45, %v257_v0 }
 0x4c3   :  { %v262_v2 = vperm.slane %v259_v1, 0 }
 0x4c5   :  { %v264_v3 = vmul.f32 %v262_v2, %v852_v19 }
 0x4c7   :  { %v266_v4 = vrot.slane %v264_v3, 1 }
 0x4c9   :  { %v268_v8 = vsel %vm92_vm0, %v266_v4, 0.0 }
 0x4ca   :  { %269 = vadd.xlane.f32.xlu0 %v268_v8 }
 0x53d   :  { %v270_v9 = vpop.xlane.xlu0 %269 }
 0x53e   :  { %v271_v10 = vrot.slane %v270_v9, 4 }
 0x540   :  { %v272_v11 = vadd.f32 %v271_v10, %v270_v9 }
 0x542   :  { %v273_v12 = vrot.slane %v272_v11, 2 }
 0x544   :  { %v274_v13 = vadd.f32 %v273_v12, %v272_v11 }
 0x546   :  { %v275_v15 = vrot.slane %v274_v13, 1 }
 0x548   :  { %v276_v16 = vadd.f32 %v275_v15, %v274_v13 }
 0x54a   :  { %658 = vpush %v276_v16 }
 0x57b   :  { %s659_s22 = spop %658 }
 0x57c   :  { %v278_v22 = vstv %s659_s22 }
 0x57d   :  { %v281_v23 = vmul.f32 %v280_v18, %v278_v22 }
 0x57f   :  { %v964_v25 = vsel %vm260_vm7, %v281_v23, 0.0 }
 0x580   :  { %v283_v26 = vmul.f32 %v964_v25, %v880_v31 }
 0x582   :  { %285 = vst [vmem:[#allocation1] sm:$0xff] %v283_v26 }
 0x589   :  { %v287_v27 = vld [vmem:[#allocation1 + $0x1] ss:$9 sm:$0xff] }
 0x58a   :  { %v289_v28 = vsub.f32 %v259_v1, %v287_v27 }
 0x58c   :  { %v291_v29 = vmul.f32 %v289_v28, %v852_v19 }
 0x58e   :  { %v292_v30 = vsel %vm92_vm0, %v291_v29, 0.0 }
 0x58f   :  { %293 = vadd.xlane.f32.xlu1 %v292_v30 }
 0x602   :  { %v294_v32 = vpop.xlane.xlu1 %293 }
 0x603   :  { %v295_v33 = vrot.slane %v294_v32, 4 }
 0x605   :  { %v296_v34 = vadd.f32 %v295_v33, %v294_v32 }
 0x607   :  { %v297_v35 = vrot.slane %v296_v34, 2 }
 0x609   :  { %v298_v36 = vadd.f32 %v297_v35, %v296_v34 }
 0x60b   :  { %v299_v38 = vrot.slane %v298_v36, 1 }
 0x60d   :  { %v300_v40 = vadd.f32 %v299_v38, %v298_v36 }
 0x60f   :  { %660 = vpush %v300_v40 }
 0x640   :  { %s661_s11 = spop %660 }
 0x641   :  { %v302_v44 = vstv %s661_s11 }
 0x642   :  { %v305_v45 = vmul.f32 %v304_v43, %v302_v44 }
 0x644   :  { %v306_v46 = vsel %vm290_vm8, %v305_v45, 0.0 }
 0x645   :  { %v307_v47 = vmul.f32 %v306_v46, %v880_v31 }
 0x647   :  { %v308_v49 = vsub.f32 %v289_v28, %v307_v47 }
 0x649   :  { %v310_v50 = vmul.f32 %v309_v48, %v308_v49 }
 0x64b   :  { %v311_v51 = vmul.f32 %v310_v50, %v880_v31 }
 0x64d   :  { %v312_v52 = vsel %vm92_vm0, %v311_v51, 0.0 }
 0x64e   :  { %313 = vadd.xlane.f32.xlu2 %v312_v52 }
 0x6c1   :  { %v314_v53 = vpop.xlane.xlu2 %313 }
 0x6c2   :  { %v315_v54 = vrot.slane %v314_v53, 4 }
 0x6c4   :  { %v316_v55 = vadd.f32 %v315_v54, %v314_v53 }
 0x6c6   :  { %v317_v56 = vrot.slane %v316_v55, 2 }
 0x6c8   :  { %v318_v59 = vadd.f32 %v317_v56, %v316_v55 }
 0x6ca   :  { %v319_v61 = vrot.slane %v318_v59, 1 }
 0x6cc   :  { %v320_v63 = vadd.f32 %v319_v61, %v318_v59 }
 0x6ce   :  { %662 = vpush %v320_v63 }
 0x6ff   :  { %s663_s25 = spop %662 }
 0x700   :  { %v322_v0 = vstv %s663_s25 }
 0x701   :  { %v323_v1 = vmul.f32 %v322_v0, %v304_v43 }
 0x703   :  { %v324_v2 = vsub.f32 %v306_v46, %v323_v1 }
 0x705   :  { %v325_v3 = vsel %vm290_vm8, %v324_v2, 0.0 }
 0x706   :  { %v326_v4 = vmul.f32 %v325_v3, %v852_v19 }
 0x708   :  { %v327_v8 = vadd.f32 %v326_v4, %v310_v50 }
 0x70a   :  { %v329_v9 = vperm.slane %v327_v8, 0 }
 0x70c   :  { %v331_v10 = vmul.f32 %v329_v9, %v880_v31 }
 0x70e   :  { %v333_v11 = vrot.slane %v331_v10, 1 }
 0x710   :  { %v335_v12 = vsel %vm92_vm0, %v333_v11, 0.0 }
 0x711   :  { %336 = vadd.xlane.f32.xlu0 %v335_v12 }
 0x784   :  { %v337_v13 = vpop.xlane.xlu0 %336 }
 0x785   :  { %v338_v15 = vrot.slane %v337_v13, 4 }
 0x787   :  { %v339_v16 = vadd.f32 %v338_v15, %v337_v13 }
 0x789   :  { %v340_v22 = vrot.slane %v339_v16, 2 }
 0x78b   :  { %v341_v23 = vadd.f32 %v340_v22, %v339_v16 }
 0x78d   :  { %v342_v26 = vrot.slane %v341_v23, 1 }
 0x78f   :  { %v343_v27 = vadd.f32 %v342_v26, %v341_v23 }
 0x791   :  { %664 = vpush %v343_v27 }
 0x7c2   :  { %s665_s10 = spop %664 }
 0x7c3   :  { %v345_v28 = vstv %s665_s10 }
 0x7c4   :  { %v346_v29 = vmul.f32 %v345_v28, %v280_v18 }
 0x7c6   :  { %v347_v30 = vsub.f32 %v964_v25, %v346_v29 }
 0x7c8   :  { %v348_v32 = vsel %vm260_vm7, %v347_v30, 0.0 }
 0x7c9   :  { %v349_v33 = vmul.f32 %v348_v32, %v852_v19 }
 0x7cb   :  { %351 = vst [vmem:[#allocation1] sm:$0xff] %v349_v33 }
 0x7d2   :  { %v353_v34 = vld [vmem:[#allocation1 + $0x1] ss:$9 sm:$0xff] }
 0x7d3   :  { %v355_v35 = vadd.f32 %v353_v34, %v327_v8 }
 0x7d5   :  { %v357_v36 = vperm.slane %v355_v35, 0 }
 0x7d7   :  { %v359_v38 = vmul.f32 %v357_v36, %v880_v31 }
 0x7d9   :  { %v361_v40 = vrot.slane %v359_v38, 2 }
 0x7db   :  { %v363_v43 = vsel %vm92_vm0, %v361_v40, 0.0 }
 0x7dc   :  { %364 = vadd.xlane.f32.xlu1 %v363_v43 }
 0x84f   :  { %v365_v44 = vpop.xlane.xlu1 %364 }
 0x850   :  { %v366_v18 = vrot.slane %v365_v44, 4 }
 0x852   :  { %v367_v45 = vadd.f32 %v366_v18, %v365_v44 }
 0x854   :  { %v368_v25 = vrot.slane %v367_v45, 2 }
 0x856   :  { %v369_v46 = vadd.f32 %v368_v25, %v367_v45 }
 0x858   :  { %v370_v47 = vrot.slane %v369_v46, 1 }
 0x85a   :  { %v371_v48 = vadd.f32 %v370_v47, %v369_v46 }
 0x85c   :  { %666 = vpush %v371_v48 }
 0x88d   :  { %s667_s26 = spop %666 }
 0x88e   :  { %v373_v49 = vstv %s667_s26 }
 0x88f   :  { %v374_v50 = vmul.f32 %v373_v49, %v250_v58 }
 0x891   :  { %v375_v51 = vsub.f32 %v950_v62, %v374_v50 }
 0x893   :  { %v376_v52 = vsel %vm230_vm6, %v375_v51, 0.0 }
 0x894   :  { %v377_v53 = vmul.f32 %v376_v52, %v852_v19 }
 0x896   :  { %379 = vst [vmem:[#allocation1] sm:$0xff] %v377_v53 }
 0x89d   :  { %v381_v54 = vld [vmem:[#allocation1 + $0x2] ss:$9 sm:$0xff] }
 0x89e   :  { %v383_v55 = vadd.f32 %v381_v54, %v355_v35 }
 0x8a0   :  { %v385_v56 = vperm.slane %v383_v55, 0 }
 0x8a2   :  { %v387_v59 = vmul.f32 %v385_v56, %v880_v31 }
 0x8a4   :  { %v389_v61 = vrot.slane %v387_v59, 3 }
 0x8a6   :  { %v391_v63 = vsel %vm92_vm0, %v389_v61, 0.0 }
 0x8a7   :  { %392 = vadd.xlane.f32.xlu2 %v391_v63 }
 0x91a   :  { %v393_v0 = vpop.xlane.xlu2 %392 }
 0x91b   :  { %v394_v58 = vrot.slane %v393_v0, 4 }
 0x91d   :  { %v395_v1 = vadd.f32 %v394_v58, %v393_v0 }
 0x91f   :  { %v396_v62 = vrot.slane %v395_v1, 2 }
 0x921   :  { %v397_v2 = vadd.f32 %v396_v62, %v395_v1 }
 0x923   :  { %v398_v3 = vrot.slane %v397_v2, 1 }
 0x925   :  { %v399_v4 = vadd.f32 %v398_v3, %v397_v2 }
 0x927   :  { %668 = vpush %v399_v4 }
 0x958   :  { %s669_s28 = spop %668 }
 0x959   :  { %v401_v8 = vstv %s669_s28 }
 0x95a   :  { %v402_v9 = vmul.f32 %v401_v8, %v220_v37 }
 0x95c   :  { %v403_v10 = vsub.f32 %v936_v41, %v402_v9 }
 0x95e   :  { %v404_v11 = vsel %vm200_vm5, %v403_v10, 0.0 }
 0x95f   :  { %v405_v12 = vmul.f32 %v404_v11, %v852_v19 }
 0x961   :  { %407 = vst [vmem:[#allocation1] sm:$0xff] %v405_v12 }
 0x968   :  { %v409_v13 = vld [vmem:[#allocation1 + $0x3] ss:$9 sm:$0xff] }
 0x969   :  { %v411_v15 = vadd.f32 %v409_v13, %v383_v55 }
 0x96b   :  { %v413_v16 = vperm.slane %v411_v15, 0 }
 0x96d   :  { %v415_v22 = vmul.f32 %v413_v16, %v880_v31 }
 0x96f   :  { %v417_v23 = vrot.slane %v415_v22, 4  ;;  %v529_v22 = vld [vmem:[%s1113_s3 + $0x78] sm:$0xff] }
 0x970   :  { %530 = vmatpush.msra.mxu0 %v529_v22 }
 0x971   :  { %v419_v26 = vsel %vm92_vm0, %v417_v23, 0.0  ;;  %v524_v23 = vld [vmem:[%s1113_s3 + $0x50] sm:$0xff] }
 0x972   :  { %420 = vadd.xlane.f32.xlu0 %v419_v26  ;;  %v523_v26 = vld [vmem:[%s1113_s3 + $0x48] sm:$0xff] }
 0x9e5   :  { %v421_v27 = vpop.xlane.xlu0 %420 }
 0x9e6   :  { %v422_v37 = vrot.slane %v421_v27, 4 }
 0x9e8   :  { %v423_v28 = vadd.f32 %v422_v37, %v421_v27  ;;  %v522_v27 = vld [vmem:[%s1113_s3 + $0x40] sm:$0xff]  ;;  %v521_v37 = vld [vmem:[%s1113_s3 + $0x38] sm:$0xff] }
 0x9ea   :  { %v424_v41 = vrot.slane %v423_v28, 2 }
 0x9ec   :  { %v425_v29 = vadd.f32 %v424_v41, %v423_v28  ;;  %v520_v28 = vld [vmem:[%s1113_s3 + $0x30] sm:$0xff] }
 0x9ee   :  { %v426_v30 = vrot.slane %v425_v29, 1 }
 0x9f0   :  { %v427_v32 = vadd.f32 %v426_v30, %v425_v29 }
 0x9f2   :  { %670 = vpush %v427_v32 }
 0xa23   :  { %s671_s29 = spop %670 }
 0xa24   :  { %v429_v33 = vstv %s671_s29 }
 0xa25   :  { %v430_v34 = vmul.f32 %v429_v33, %v190_v14 }
 0xa27   :  { %v431_v35 = vsub.f32 %v922_v17, %v430_v34 }
 0xa29   :  { %v432_v36 = vsel %vm170_vm4, %v431_v35, 0.0 }
 0xa2a   :  { %v433_v38 = vmul.f32 %v432_v36, %v852_v19  ;;  %v519_v36 = vld [vmem:[%s1113_s3 + $0x28] sm:$0xff] }
 0xa2c   :  { %435 = vst [vmem:[#allocation1] sm:$0xff] %v433_v38  ;;  %v518_v38 = vld [vmem:[%s1113_s3 + $0x20] sm:$0xff] }
 0xa33   :  { %v437_v40 = vld [vmem:[#allocation1 + $0x4] ss:$9 sm:$0xff] }
 0xa34   :  { %v439_v43 = vadd.f32 %v437_v40, %v411_v15  ;;  %v517_v40 = vld [vmem:[%s1113_s3 + $0x18] sm:$0xff] }
 0xa36   :  { %v441_v44 = vperm.slane %v439_v43, 0 }
 0xa38   :  { %v443_v18 = vmul.f32 %v441_v44, %v880_v31  ;;  %v515_v44 = vld [vmem:[%s1113_s3 + $0x8] sm:$0xff] }
 0xa3a   :  { %v445_v45 = vrot.slane %v443_v18, 5  ;;  %v514_v18 = vld [vmem:[%s1113_s3] sm:$0xff] }
 0xa3c   :  { %v447_v25 = vsel %vm92_vm0, %v445_v45, 0.0 }
 0xa3d   :  { %448 = vadd.xlane.f32.xlu1 %v447_v25 }
 0xab0   :  { %v449_v46 = vpop.xlane.xlu1 %448 }
 0xab1   :  { %v450_v14 = vrot.slane %v449_v46, 4 }
 0xab3   :  { %v451_v47 = vadd.f32 %v450_v14, %v449_v46 }
 0xab5   :  { %v452_v17 = vrot.slane %v451_v47, 2 }
 0xab7   :  { %v453_v48 = vadd.f32 %v452_v17, %v451_v47 }
 0xab9   :  { %v454_v49 = vrot.slane %v453_v48, 1 }
 0xabb   :  { %v455_v50 = vadd.f32 %v454_v49, %v453_v48 }
 0xabd   :  { %672 = vpush %v455_v50  ;;  %v719_v50 = vmov 0.0  }
 0xabe   :  { %551 = vst [vmem:[%s1126_s16] sm:$0x1] %v719_v50 }
 0xaee   :  { %s673_s30 = spop %672 }
 0xaef   :  { %v457_v51 = vstv %s673_s30 }
 0xaf0   :  { %v458_v52 = vmul.f32 %v457_v51, %v160_v57 }
 0xaf2   :  { %v459_v53 = vsub.f32 %v908_v60, %v458_v52 }
 0xaf4   :  { %v460_v54 = vsel %vm140_vm3, %v459_v53, 0.0 }
 0xaf5   :  { %v461_v55 = vmul.f32 %v460_v54, %v852_v19 }
 0xaf7   :  { %463 = vst [vmem:[#allocation1] sm:$0xff] %v461_v55 }
 0xafe   :  { %v465_v56 = vld [vmem:[#allocation1 + $0x5] ss:$9 sm:$0xff] }
 0xaff   :  { %v467_v59 = vadd.f32 %v465_v56, %v439_v43  ;;  %v516_v43 = vld [vmem:[%s1113_s3 + $0x10] sm:$0xff] }
 0xb01   :  { %v469_v61 = vperm.slane %v467_v59, 0 }
 0xb03   :  { %v471_v63 = vmul.f32 %v469_v61, %v880_v31 }
 0xb05   :  { %v473_v0 = vrot.slane %v471_v63, 6 }
 0xb07   :  { %v475_v58 = vsel %vm92_vm0, %v473_v0, 0.0 }
 0xb08   :  { %476 = vadd.xlane.f32.xlu2 %v475_v58 }
 0xb7b   :  { %v477_v1 = vpop.xlane.xlu2 %476 }
 0xb7c   :  { %v478_v57 = vrot.slane %v477_v1, 4 }
 0xb7e   :  { %v479_v62 = vadd.f32 %v478_v57, %v477_v1 }
 0xb80   :  { %v480_v60 = vrot.slane %v479_v62, 2 }
 0xb82   :  { %v481_v2 = vadd.f32 %v480_v60, %v479_v62 }
 0xb84   :  { %v482_v3 = vrot.slane %v481_v2, 1 }
 0xb86   :  { %v483_v4 = vadd.f32 %v482_v3, %v481_v2 }
 0xb88   :  { %674 = vpush %v483_v4 }
 0xbb9   :  { %s675_s0 = spop %674 }
 0xbba   :  { %v485_v8 = vstv %s675_s0 }
 0xbbb   :  { %v486_v9 = vmul.f32 %v485_v8, %v130_v39  ;;  %v528_v39 = vld [vmem:[%s1113_s3 + $0x70] sm:$0xff] }
 0xbbc   :  { %531 = vmatpush.msra.mxu0 %v528_v39 }
 0xbbd   :  { %v487_v10 = vsub.f32 %v894_v42, %v486_v9  ;;  %v525_v42 = vld [vmem:[%s1113_s3 + $0x58] sm:$0xff] }
 0xbbf   :  { %v488_v31 = vsel %vm110_vm2, %v487_v10, 0.0 }
 0xbc0   :  { %v489_v11 = vmul.f32 %v488_v31, %v852_v19  ;;  %v527_v19 = vld [vmem:[%s1113_s3 + $0x68] sm:$0xff] }
 0xbc1   :  { %532 = vmatpush.msra.mxu0 %v527_v19 }
 0xbc2   :  { %491 = vst [vmem:[#allocation1] sm:$0xff] %v489_v11 }
 0xbc9   :  { %v493_v12 = vld [vmem:[#allocation1 + $0x6] ss:$9 sm:$0xff] }
 0xbca   :  { %v495_v13 = vadd.f32 %v493_v12, %v467_v59 }
 0xbcc   :  { %v496_v15 = vmul.f32 %v495_v13, %v825_v6  ;;  %v526_v6 = vld [vmem:[%s1113_s3 + $0x60] sm:$0xff] }
 0xbcd   :  { %533 = vmatpush.msra.mxu0 %v526_v6 }
 0xbce   :  { %v497_v16 = vsel %vm92_vm0, %v496_v15, 0.0 }
 0xbcf   :  { %498 = vadd.xlane.f32.xlu0 %v497_v16  ;;  %534 = vmatpush.msra.mxu0 %v525_v42 }
 0xbd1   :  { %535 = vmatpush.msra.mxu0 %v524_v23 }
 0xbd3   :  { %536 = vmatpush.msra.mxu0 %v523_v26 }
 0xbd5   :  { %537 = vmatpush.msra.mxu0 %v522_v27 }
 0xbd7   :  { %538 = vmatpush.msra.mxu0 %v521_v37 }
 0xbd9   :  { %539 = vmatpush.msra.mxu0 %v520_v28 }
 0xbdb   :  { %540 = vmatpush.msra.mxu0 %v519_v36 }
 0xbdd   :  { %541 = vmatpush.msra.mxu0 %v518_v38 }
 0xbdf   :  { %542 = vmatpush.msra.mxu0 %v517_v40 }
 0xbe1   :  { %543 = vmatpush.msra.mxu0 %v516_v43 }
 0xbe3   :  { %544 = vmatpush.msra.mxu0 %v515_v44 }
 0xbe5   :  { %545 = vmatpush.msra.mxu0 %v514_v18 }
 0xc42   :  { %v499_v41 = vpop.xlane.xlu0 %498 }
 0xc43   :  { %v500_v29 = vrot.slane %v499_v41, 4 }
 0xc45   :  { %v501_v30 = vadd.f32 %v500_v29, %v499_v41 }
 0xc47   :  { %v502_v32 = vrot.slane %v501_v30, 2 }
 0xc49   :  { %v503_v33 = vadd.f32 %v502_v32, %v501_v30 }
 0xc4b   :  { %v504_v34 = vrot.slane %v503_v33, 1 }
 0xc4d   :  { %v505_v35 = vadd.f32 %v504_v34, %v503_v33 }
 0xc4f   :  { %676 = vpush %v505_v35 }
 0xc80   :  { %s677_s15 = spop %676 }
 0xc81   :  { %v507_v45 = vstv %s677_s15 }
 0xc82   :  { %v508_v25 = vmul.f32 %v507_v45, %v105_v21 }
 0xc84   :  { %v509_v46 = vsub.f32 %v871_v24, %v508_v25 }
 0xc86   :  { %v510_v14 = vsel %vm90_vm1, %v509_v46, 0.0 }
 0xc87   :  { %v511_v47 = vmul.f32 %v510_v14, %v823_v5 }
 0xc89   :  { %v512_v17 = vadd.f32 %v511_v47, %v495_v13 }
 0xc8b   :  { %513 = vst [vmem:[%s1122_s12] sm:$0x1] %v512_v17  ;;  %546 = vmatmul.f32.vlgmr.msra.gmra.mxu0 %v512_v17  ;;  %v552_v48 = vmul.f32 %v512_v17, %v828_v7 }
 0xc8d   :  { %v553_v49 = vsel %vm92_vm0, %v552_v48, 0.0 }
 0xc8e   :  { %554 = vadd.xlane.f32.xlu1 %v553_v49 }
 0xd01   :  { %v555_v20 = vpop.xlane.xlu1 %554 }
 0xd02   :  { %v556_v21 = vrot.slane %v555_v20, 4 }
 0xd04   :  { %v557_v24 = vadd.f32 %v556_v21, %v555_v20 }
 0xd06   :  { %v558_v5 = vrot.slane %v557_v24, 2 }
 0xd08   :  { %v547_v51 = vpop.f32.mrf.mxu0  ;;  %v559_v52 = vadd.f32 %v558_v5, %v557_v24 }
 0xd09   :  { %550 = vst [vmem:[%s1123_s13] sm:$0x1] %v547_v51  ;;  %v594_v53 = vmul.f32 %v547_v51, %v547_v51  ;;  %v580_v54 = vmul.f32 %v547_v51, %v828_v7  ;;  %v566_v55 = vmul.f32 %v547_v51, %v512_v17 }
 0xd0a   :  { %v560_v56 = vrot.slane %v559_v52, 1 }
 0xd0b   :  { %v595_v59 = vsel %vm92_vm0, %v594_v53, 0.0  ;;  %v581_v61 = vsel %vm92_vm0, %v580_v54, 0.0  ;;  %v567_v63 = vsel %vm92_vm0, %v566_v55, 0.0 }
 0xd0c   :  { %596 = vadd.xlane.f32.xlu1 %v595_v59  ;;  %582 = vadd.xlane.f32.xlu0 %v581_v61  ;;  %v561_v0 = vadd.f32 %v560_v56, %v559_v52 }
 0xd0d   :  { %568 = vadd.xlane.f32.xlu2 %v567_v63 }
 0xd0e   :  { %678 = vpush %v561_v0 }
 0xd3f   :  { %s679_s12 = spop %678 }
 0xd40   :  { %v563_v58 = vstv %s679_s12 }
 0xd41   :  { %565 = vst.msk [vmem:[%s1126_s16] sm:$0x1] %vm564_vm9, %v563_v58 }
 0xd7f   :  { %v597_v7 = vpop.xlane.xlu1 %596  ;;  %v583_v1 = vpop.xlane.xlu0 %582 }
 0xd80   :  { %v598_v57 = vrot.slane %v597_v7, 4  ;;  %v584_v62 = vrot.slane %v583_v1, 4  ;;  %v569_v60 = vpop.xlane.xlu2 %568 }
 0xd81   :  { %v570_v2 = vrot.slane %v569_v60, 4 }
 0xd82   :  { %v599_v3 = vadd.f32 %v598_v57, %v597_v7  ;;  %v585_v4 = vadd.f32 %v584_v62, %v583_v1 }
 0xd83   :  { %v571_v8 = vadd.f32 %v570_v2, %v569_v60 }
 0xd84   :  { %v600_v9 = vrot.slane %v599_v3, 2  ;;  %v586_v10 = vrot.slane %v585_v4, 2 }
 0xd85   :  { %v572_v31 = vrot.slane %v571_v8, 2 }
 0xd86   :  { %v601_v11 = vadd.f32 %v600_v9, %v599_v3  ;;  %v587_v12 = vadd.f32 %v586_v10, %v585_v4 }
 0xd87   :  { %v573_v13 = vadd.f32 %v572_v31, %v571_v8 }
 0xd88   :  { %v588_v15 = vrot.slane %v587_v12, 1  ;;  %v602_v16 = vrot.slane %v601_v11, 1 }
 0xd89   :  { %v574_v22 = vrot.slane %v573_v13, 1 }
 0xd8a   :  { %v589_v39 = vadd.f32 %v588_v15, %v587_v12  ;;  %v603_v6 = vadd.f32 %v602_v16, %v601_v11 }
 0xd8b   :  { %v575_v19 = vadd.f32 %v574_v22, %v573_v13 }
 0xd8d   :  { %680 = vpush %v575_v19 }
 0xd8e   :  { %682 = vpush %v589_v39 }
 0xd8f   :  { %684 = vpush %v603_v6 }
 0xdbe   :  { %s681_s4 = spop %680 }
 0xdbf   :  { %v577_v42 = vstv %s681_s4  ;;  %s683_s7 = spop %682 }
 0xdc0   :  { %579 = vst.msk [vmem:[%s1126_s16] sm:$0x1] %vm578_vm10, %v577_v42  ;;  %v591_v23 = vstv %s683_s7  ;;  %s685_s23 = spop %684 }
 0xdc1   :  { %593 = vst.msk [vmem:[%s1126_s16] sm:$0x1] %vm592_vm11, %v591_v23  ;;  %v605_v26 = vstv %s685_s23 }
 0xdc2   :  { %607 = vst.msk [vmem:[%s1126_s16] sm:$0x1] %vm606_vm12, %v605_v26 }
 0xdc3   :  { %636 = vsyncpa [#allocation4], 1 }
 0xdc4   :  { %637 = vsyncpa [#allocation6], 1 }

</bundles_post_ra>
